<compile_context>
chip_gen: v6e
topology: v6e:2x2x1
jax: 0.10.0
libtpu: 0.0.40
codegen_flags: <defaults>
</compile_context>

<pallas_src>
import math
import functools

import jax
import jax.numpy as jnp
from jax import lax
from jax.experimental import pallas as pl
from jax.experimental.pallas import tpu as pltpu

BN_EPS = 1e-5
LANE = 128


def _round_up(n, m):
    return ((n + m - 1) // m) * m


def _pad2(a, rows, cols):
    return jnp.pad(a, ((0, rows - a.shape[0]), (0, cols - a.shape[1])))


# ---------------------------------------------------------------------------
# Fused kernel: packed-gate LSTM -> ReLU -> 4x(Linear+ReLU+BN) -> folded out.
# ---------------------------------------------------------------------------
def fused_kernel(x_ref, wih_ref, whh_ref,
                 w1_ref, w2_ref, w3_ref, w4_ref, wo_ref,
                 vec_ref, out_ref):
    S = x_ref.shape[0]
    GW = whh_ref.shape[1]              # packed gate width = 4 * hidden = 128
    H = GW // 4
    f32 = jnp.float32

    # bf16-stored weights, upcast once (off the serial chain), f32 arithmetic.
    w_ih = wih_ref[...].astype(f32)
    w_hh = whh_ref[...].astype(f32)

    # ------------------------- LSTM stage -------------------------
    # Hoisted input projection + folded (b_ih + b_hh) bias: one MXU matmul.
    xw = jnp.dot(x_ref[...], w_ih, preferred_element_type=f32) \
        + vec_ref[0:1, :GW]                                    # (S, GW)

    # Gates packed as [i | f | g | o], H lanes each, inside one 128-lane vreg.
    # One sigmoid + one tanh over the whole vreg per step; gate alignment via
    # XLU lane rolls.  Lanes >= H of h/c hold bounded garbage that only ever
    # multiplies zero-padded weight rows downstream.
    rows = []

    # t = 0 peeled: h0 = c0 = 0  =>  gates = xw[0], c = i*g, no h @ W_hh.
    sig0 = jax.nn.sigmoid(xw[0:1, :])
    tnh0 = jnp.tanh(xw[0:1, :])
    c = sig0 * pltpu.roll(tnh0, GW - 2 * H, 1)                 # i * g
    h = pltpu.roll(sig0, GW - 3 * H, 1) * jnp.tanh(c)          # o * tanh(c)
    rows.append(jnp.maximum(h, 0.0))                           # fused torch.relu

    for t in range(1, S):                                      # fully unrolled
        gates = xw[t:t + 1, :] + jnp.dot(h, w_hh, preferred_element_type=f32)
        sig = jax.nn.sigmoid(gates)
        tnh = jnp.tanh(gates)
        c = pltpu.roll(sig, GW - H, 1) * c \
            + sig * pltpu.roll(tnh, GW - 2 * H, 1)             # f*c + i*g
        h = pltpu.roll(sig, GW - 3 * H, 1) * jnp.tanh(c)       # o * tanh(c)
        rows.append(jnp.maximum(h, 0.0))

    hs = jnp.concatenate(rows, axis=0)                         # (S, GW), in vregs

    # ------------------------- MLP stage -------------------------
    def lin(a, w_ref, bias):
        return jnp.dot(a, w_ref[...].astype(f32),
                       preferred_element_type=f32) + bias

    def bn(a, gamma, beta):
        # training-mode batch statistics; one-pass variance E[x^2] - mu^2.
        mu = jnp.mean(a, axis=0, keepdims=True)
        var = jnp.mean(a * a, axis=0, keepdims=True) - mu * mu
        return (a - mu) * lax.rsqrt(var + BN_EPS) * gamma + beta

    v = vec_ref
    n1, n2, n3, n4, no = (w1_ref.shape[1], w2_ref.shape[1], w3_ref.shape[1],
                          w4_ref.shape[1], wo_ref.shape[1])

    # dropout(p=0.0) is the identity and is elided.
    a = bn(jnp.maximum(lin(hs, w1_ref, v[1:2, :n1]), 0.0),
           v[2:3, :n1], v[3:4, :n1])
    a = bn(jnp.maximum(lin(a, w2_ref, v[4:5, :n2]), 0.0),
           v[5:6, :n2], v[6:7, :n2])
    a = bn(jnp.maximum(lin(a, w3_ref, v[7:8, :n3]), 0.0),
           v[8:9, :n3], v[9:10, :n3])
    a = bn(jnp.maximum(lin(a, w4_ref, v[10:11, :n4]), 0.0),
           v[11:12, :n4], v[12:13, :n4])
    # fc5 + out_linear folded offline into a single matmul.
    out_ref[...] = lin(a, wo_ref, v[13:14, :no])


def fused_forward(x, kparams, output_size):
    w_ih, w_hh, w1, w2, w3, w4, w_out, vec = kparams
    S = x.shape[0]
    out_pad = w_out.shape[1]
    args = (x, w_ih, w_hh, w1, w2, w3, w4, w_out, vec)
    nbytes = sum(int(a.size) * jnp.dtype(a.dtype).itemsize for a in args)
    nbytes += S * out_pad * 4

    out = pl.pallas_call(
        fused_kernel,
        out_shape=jax.ShapeDtypeStruct((S, out_pad), jnp.float32),
        in_specs=[pl.BlockSpec(memory_space=pltpu.MemorySpace.VMEM)
                  for _ in args],
        out_specs=pl.BlockSpec(memory_space=pltpu.MemorySpace.VMEM),
        cost_estimate=pl.CostEstimate(flops=1_200_000,
                                      transcendentals=4_000,
                                      bytes_accessed=int(nbytes)),
    )(*args)
    # Slice the lane-padded output back to the real output width.
    return out[:, :output_size]


# ---------------------------------------------------------------------------
# Deterministic parameter construction (matches module init) + TPU layouts.
# ---------------------------------------------------------------------------
def xavier_uniform(key, fan_in, fan_out):
    limit = math.sqrt(6.0 / (fan_in + fan_out))
    return jax.random.uniform(key, (fan_in, fan_out), jnp.float32,
                              -limit, limit)


def orthogonal(key, rows, cols):
    a = jax.random.normal(key, (rows, cols), jnp.float32)
    q, r = jnp.linalg.qr(a)
    return q * jnp.sign(jnp.diagonal(r))[None, :]


def build_params(input_size, hidden_size, output_size, key):
    H = hidden_size
    ks = jax.random.split(key, 8)

    # nn.LSTM: weight_ih xavier_uniform, weight_hh orthogonal, biases zero.
    # Stored pre-transposed (in, out); gate order [i, f, g, o] like torch.
    lim_ih = math.sqrt(6.0 / (4 * H + input_size))
    w_ih = jax.random.uniform(ks[0], (input_size, 4 * H), jnp.float32,
                              -lim_ih, lim_ih)
    w_hh = orthogonal(ks[1], 4 * H, H).T                       # (H, 4H)
    b = jnp.zeros((1, 4 * H), jnp.float32)                     # b_ih + b_hh

    dims = [H, 256, 128, 64, 32, 16, output_size]
    mlp = []
    for li in range(5):
        w = xavier_uniform(ks[2 + li], dims[li], dims[li + 1])
        bi = jnp.zeros((1, dims[li + 1]), jnp.float32)
        mlp.append((w, bi))
    w_out = xavier_uniform(ks[7], dims[5], dims[6])
    b_out = jnp.zeros((1, dims[6]), jnp.float32)

    bn = [(jnp.ones((1, dims[i + 1]), jnp.float32),
           jnp.zeros((1, dims[i + 1]), jnp.float32)) for i in range(4)]

    flat = []
    for li in range(4):
        flat += [mlp[li][0], mlp[li][1], bn[li][0], bn[li][1]]
    flat += [mlp[4][0], mlp[4][1], w_out, b_out]
    return (w_ih, w_hh, b), tuple(flat)


def prepare_params(lstm_params, mlp_params, hidden_size, output_size,
                   weight_dtype=jnp.bfloat16):
    """Pack/pad params for the kernel; also return identical-value f32 params
    for the pure-JAX reference so the numerics are apples-to-apples."""
    H = hidden_size
    GW = 4 * H
    assert GW % LANE == 0, "packed-gate layout needs 4*hidden_size % 128 == 0"

    w_ih, w_hh, b = lstm_params
    (w1, b1, g1, t1, w2, b2, g2, t2, w3, b3, g3, t3,
     w4, b4, g4, t4, w5, b5, wo, bo) = mlp_params

    # Fold fc5 + out_linear offline (no nonlinearity/BN between them): exact.
    w_out = w5 @ wo                          # (32, output)
    b_out = b5 @ wo + bo                     # (1, output)

    # bf16 weight storage; kernel upcasts and accumulates in f32.
    q = lambda w: w.astype(weight_dtype)
    wq = dict(w_ih=q(w_ih), w_hh=q(w_hh), w1=q(w1), w2=q(w2), w3=q(w3),
              w4=q(w4), w_out=q(w_out))

    pin = [GW, 256, 128, 128, 128]
    pout = [256, 128, _round_up(64, LANE), _round_up(32, LANE),
            _round_up(output_size, LANE)]
    vec_w = max(pout)

    kern_weights = (
        wq["w_ih"],                                   # (I, GW)
        _pad2(wq["w_hh"], GW, GW),                    # (GW, GW), rows >= H zero
        _pad2(wq["w1"], pin[0], pout[0]),
        _pad2(wq["w2"], pin[1], pout[1]),
        _pad2(wq["w3"], pin[2], pout[2]),
        _pad2(wq["w4"], pin[3], pout[3]),
        _pad2(wq["w_out"], pin[4], pout[4]),
    )

    # Pack all small per-feature vectors into one (14, vec_w) f32 array:
    # row 0 LSTM bias; rows 1-12 (bias, gamma, beta) x 4 BN layers; row 13 out bias.
    row = lambda a: _pad2(a, 1, vec_w)
    vec = jnp.concatenate(
        [row(b),
         row(b1), row(g1), row(t1),
         row(b2), row(g2), row(t2),
         row(b3), row(g3), row(t3),
         row(b4), row(g4), row(t4),
         row(b_out)],
        axis=0).astype(jnp.float32)

    kparams = kern_weights + (vec,)

    # Reference sees exactly the same (bf16-rounded) weight values, in f32.
    deq = lambda name: wq[name].astype(jnp.float32)
    ref = dict(
        w_ih=deq("w_ih"), w_hh=deq("w_hh"), b=b,
        mlp=[(deq("w1"), b1, g1, t1), (deq("w2"), b2, g2, t2),
             (deq("w3"), b3, g3, t3), (deq("w4"), b4, g4, t4)],
        w_out=deq("w_out"), b_out=b_out,
    )
    return kparams, ref


# ---------------------------------------------------------------------------
# Pure-JAX reference (unpadded) for a sanity check.
# ---------------------------------------------------------------------------
def reference_forward(x, ref):
    w_ih, w_hh, b = ref["w_ih"], ref["w_hh"], ref["b"]
    H = w_hh.shape[0]

    def step(carry, x_t):
        h, c = carry
        gates = x_t @ w_ih + h @ w_hh + b[0]
        i = jax.nn.sigmoid(gates[0:H])
        f = jax.nn.sigmoid(gates[H:2 * H])
        g = jnp.tanh(gates[2 * H:3 * H])
        o = jax.nn.sigmoid(gates[3 * H:4 * H])
        c = f * c + i * g
        h = o * jnp.tanh(c)
        return (h, c), h

    _, hs = lax.scan(step, (jnp.zeros(H), jnp.zeros(H)), x)
    a = jnp.maximum(hs, 0.0)

    def bn(a, gamma, beta):
        mu = jnp.mean(a, axis=0, keepdims=True)
        var = jnp.mean((a - mu) ** 2, axis=0, keepdims=True)
        return (a - mu) / jnp.sqrt(var + BN_EPS) * gamma + beta

    for (w, bi, g, t) in ref["mlp"]:
        a = bn(jnp.maximum(a @ w + bi, 0.0), g, t)
    return a @ ref["w_out"] + ref["b_out"]


if __name__ == "__main__":
    SEQ, INPUT_SIZE, HIDDEN_SIZE, OUTPUT_SIZE = 8, 8, 32, 4

    key = jax.random.PRNGKey(0)
    k_x, k_p = jax.random.split(key)
    x = jax.random.normal(k_x, (SEQ, INPUT_SIZE), jnp.float32)

    lstm_params, mlp_params = build_params(INPUT_SIZE, HIDDEN_SIZE,
                                           OUTPUT_SIZE, k_p)
    kparams, ref_params = prepare_params(lstm_params, mlp_params,
                                         HIDDEN_SIZE, OUTPUT_SIZE)

    fwd = jax.jit(functools.partial(fused_forward, output_size=OUTPUT_SIZE))
    out = jax.block_until_ready(fwd(x, kparams))

    ref = reference_forward(x, ref_params)
    assert out.shape == (SEQ, OUTPUT_SIZE)
    max_err = float(jnp.max(jnp.abs(out - ref)))
    assert jnp.allclose(out, ref, atol=1e-3, rtol=1e-3), ("max_err", max_err)

    print("KERNEL_OK")
</pallas_src>

<mosaic_0001>
module attributes {stable_mosaic.version = 11 : i64} {
  func.func @fused_kernel(%arg0: memref<8x8xf32, #tpu.memory_space<vmem>>, %arg1: memref<8x128xbf16, #tpu.memory_space<vmem>>, %arg2: memref<128x128xbf16, #tpu.memory_space<vmem>>, %arg3: memref<128x256xbf16, #tpu.memory_space<vmem>>, %arg4: memref<256x128xbf16, #tpu.memory_space<vmem>>, %arg5: memref<128x128xbf16, #tpu.memory_space<vmem>>, %arg6: memref<128x128xbf16, #tpu.memory_space<vmem>>, %arg7: memref<128x128xbf16, #tpu.memory_space<vmem>>, %arg8: memref<14x256xf32, #tpu.memory_space<vmem>>, %arg9: memref<8x128xf32, #tpu.memory_space<vmem>>) attributes {dimension_semantics = [], scalar_prefetch = 0 : i64, scratch_operands = 0 : i64, tpu.core_type = #tpu.core_type<tc>} {
    %c0 = arith.constant 0 : index
    %c0_0 = arith.constant 0 : index
    %0 = vector.load %arg1[%c0, %c0_0] : memref<8x128xbf16, #tpu.memory_space<vmem>>, vector<8x128xbf16>
    %1 = arith.extf %0 : vector<8x128xbf16> to vector<8x128xf32>
    %c0_1 = arith.constant 0 : index
    %c0_2 = arith.constant 0 : index
    %2 = vector.load %arg2[%c0_1, %c0_2] : memref<128x128xbf16, #tpu.memory_space<vmem>>, vector<128x128xbf16>
    %3 = arith.extf %2 : vector<128x128xbf16> to vector<128x128xf32>
    %c0_3 = arith.constant 0 : index
    %c0_4 = arith.constant 0 : index
    %4 = vector.load %arg0[%c0_3, %c0_4] : memref<8x8xf32, #tpu.memory_space<vmem>>, vector<8x8xf32>
    %cst = arith.constant dense<0.000000e+00> : vector<8x128xf32>
    %5 = tpu.matmul %4, %1, %cst {dimension_numbers = #tpu.dot_dimension_numbers<[1], [0], [0], [1], [0, 0, 1, 1], [], []>} : vector<8x8xf32>, vector<8x128xf32>, vector<8x128xf32> -> vector<8x128xf32>
    %c0_5 = arith.constant 0 : index
    %c0_6 = arith.constant 0 : index
    %6 = vector.load %arg8[%c0_5, %c0_6] : memref<14x256xf32, #tpu.memory_space<vmem>>, vector<1x128xf32>
    %7 = vector.broadcast %6 : vector<1x128xf32> to vector<8x128xf32>
    %8 = arith.addf %5, %7 : vector<8x128xf32>
    %9 = vector.extract_strided_slice %8 {offsets = [0, 0], sizes = [1, 128], strides = [1, 1]} : vector<8x128xf32> to vector<1x128xf32>
    %10 = arith.negf %9 : vector<1x128xf32>
    %11 = math.exp %10 : vector<1x128xf32>
    %cst_7 = arith.constant 1.000000e+00 : f32
    %12 = vector.broadcast %cst_7 : f32 to vector<1x128xf32>
    %13 = arith.addf %12, %11 : vector<1x128xf32>
    %14 = arith.divf %12, %13 : vector<1x128xf32>
    %15 = vector.extract_strided_slice %8 {offsets = [0, 0], sizes = [1, 128], strides = [1, 1]} : vector<8x128xf32> to vector<1x128xf32>
    %16 = math.tanh %15 : vector<1x128xf32>
    %c64_i32 = arith.constant 64 : i32
    %17 = tpu.dynamic_rotate %16 by %c64_i32 dim 1 : vector<1x128xf32>, i32 -> vector<1x128xf32>
    %18 = arith.mulf %14, %17 : vector<1x128xf32>
    %c32_i32 = arith.constant 32 : i32
    %19 = tpu.dynamic_rotate %14 by %c32_i32 dim 1 : vector<1x128xf32>, i32 -> vector<1x128xf32>
    %20 = math.tanh %18 : vector<1x128xf32>
    %21 = arith.mulf %19, %20 : vector<1x128xf32>
    %cst_8 = arith.constant 0.000000e+00 : f32
    %22 = vector.broadcast %cst_8 : f32 to vector<1x128xf32>
    %23 = arith.maximumf %21, %22 : vector<1x128xf32>
    %24 = vector.extract_strided_slice %8 {offsets = [1, 0], sizes = [1, 128], strides = [1, 1]} : vector<8x128xf32> to vector<1x128xf32>
    %cst_9 = arith.constant dense<0.000000e+00> : vector<1x128xf32>
    %25 = tpu.matmul %21, %3, %cst_9 {dimension_numbers = #tpu.dot_dimension_numbers<[1], [0], [0], [1], [0, 0, 1, 1], [], []>} : vector<1x128xf32>, vector<128x128xf32>, vector<1x128xf32> -> vector<1x128xf32>
    %26 = arith.addf %24, %25 : vector<1x128xf32>
    %27 = arith.negf %26 : vector<1x128xf32>
    %28 = math.exp %27 : vector<1x128xf32>
    %cst_10 = arith.constant 1.000000e+00 : f32
    %29 = vector.broadcast %cst_10 : f32 to vector<1x128xf32>
    %30 = arith.addf %29, %28 : vector<1x128xf32>
    %31 = arith.divf %29, %30 : vector<1x128xf32>
    %32 = math.tanh %26 : vector<1x128xf32>
    %c96_i32 = arith.constant 96 : i32
    %33 = tpu.dynamic_rotate %31 by %c96_i32 dim 1 : vector<1x128xf32>, i32 -> vector<1x128xf32>
    %34 = arith.mulf %33, %18 : vector<1x128xf32>
    %c64_i32_11 = arith.constant 64 : i32
    %35 = tpu.dynamic_rotate %32 by %c64_i32_11 dim 1 : vector<1x128xf32>, i32 -> vector<1x128xf32>
    %36 = arith.mulf %31, %35 : vector<1x128xf32>
    %37 = arith.addf %34, %36 : vector<1x128xf32>
    %c32_i32_12 = arith.constant 32 : i32
    %38 = tpu.dynamic_rotate %31 by %c32_i32_12 dim 1 : vector<1x128xf32>, i32 -> vector<1x128xf32>
    %39 = math.tanh %37 : vector<1x128xf32>
    %40 = arith.mulf %38, %39 : vector<1x128xf32>
    %cst_13 = arith.constant 0.000000e+00 : f32
    %41 = vector.broadcast %cst_13 : f32 to vector<1x128xf32>
    %42 = arith.maximumf %40, %41 : vector<1x128xf32>
    %43 = vector.extract_strided_slice %8 {offsets = [2, 0], sizes = [1, 128], strides = [1, 1]} : vector<8x128xf32> to vector<1x128xf32>
    %cst_14 = arith.constant dense<0.000000e+00> : vector<1x128xf32>
    %44 = tpu.matmul %40, %3, %cst_14 {dimension_numbers = #tpu.dot_dimension_numbers<[1], [0], [0], [1], [0, 0, 1, 1], [], []>} : vector<1x128xf32>, vector<128x128xf32>, vector<1x128xf32> -> vector<1x128xf32>
    %45 = arith.addf %43, %44 : vector<1x128xf32>
    %46 = arith.negf %45 : vector<1x128xf32>
    %47 = math.exp %46 : vector<1x128xf32>
    %cst_15 = arith.constant 1.000000e+00 : f32
    %48 = vector.broadcast %cst_15 : f32 to vector<1x128xf32>
    %49 = arith.addf %48, %47 : vector<1x128xf32>
    %50 = arith.divf %48, %49 : vector<1x128xf32>
    %51 = math.tanh %45 : vector<1x128xf32>
    %c96_i32_16 = arith.constant 96 : i32
    %52 = tpu.dynamic_rotate %50 by %c96_i32_16 dim 1 : vector<1x128xf32>, i32 -> vector<1x128xf32>
    %53 = arith.mulf %52, %37 : vector<1x128xf32>
    %c64_i32_17 = arith.constant 64 : i32
    %54 = tpu.dynamic_rotate %51 by %c64_i32_17 dim 1 : vector<1x128xf32>, i32 -> vector<1x128xf32>
    %55 = arith.mulf %50, %54 : vector<1x128xf32>
    %56 = arith.addf %53, %55 : vector<1x128xf32>
    %c32_i32_18 = arith.constant 32 : i32
    %57 = tpu.dynamic_rotate %50 by %c32_i32_18 dim 1 : vector<1x128xf32>, i32 -> vector<1x128xf32>
    %58 = math.tanh %56 : vector<1x128xf32>
    %59 = arith.mulf %57, %58 : vector<1x128xf32>
    %cst_19 = arith.constant 0.000000e+00 : f32
    %60 = vector.broadcast %cst_19 : f32 to vector<1x128xf32>
    %61 = arith.maximumf %59, %60 : vector<1x128xf32>
    %62 = vector.extract_strided_slice %8 {offsets = [3, 0], sizes = [1, 128], strides = [1, 1]} : vector<8x128xf32> to vector<1x128xf32>
    %cst_20 = arith.constant dense<0.000000e+00> : vector<1x128xf32>
    %63 = tpu.matmul %59, %3, %cst_20 {dimension_numbers = #tpu.dot_dimension_numbers<[1], [0], [0], [1], [0, 0, 1, 1], [], []>} : vector<1x128xf32>, vector<128x128xf32>, vector<1x128xf32> -> vector<1x128xf32>
    %64 = arith.addf %62, %63 : vector<1x128xf32>
    %65 = arith.negf %64 : vector<1x128xf32>
    %66 = math.exp %65 : vector<1x128xf32>
    %cst_21 = arith.constant 1.000000e+00 : f32
    %67 = vector.broadcast %cst_21 : f32 to vector<1x128xf32>
    %68 = arith.addf %67, %66 : vector<1x128xf32>
    %69 = arith.divf %67, %68 : vector<1x128xf32>
    %70 = math.tanh %64 : vector<1x128xf32>
    %c96_i32_22 = arith.constant 96 : i32
    %71 = tpu.dynamic_rotate %69 by %c96_i32_22 dim 1 : vector<1x128xf32>, i32 -> vector<1x128xf32>
    %72 = arith.mulf %71, %56 : vector<1x128xf32>
    %c64_i32_23 = arith.constant 64 : i32
    %73 = tpu.dynamic_rotate %70 by %c64_i32_23 dim 1 : vector<1x128xf32>, i32 -> vector<1x128xf32>
    %74 = arith.mulf %69, %73 : vector<1x128xf32>
    %75 = arith.addf %72, %74 : vector<1x128xf32>
    %c32_i32_24 = arith.constant 32 : i32
    %76 = tpu.dynamic_rotate %69 by %c32_i32_24 dim 1 : vector<1x128xf32>, i32 -> vector<1x128xf32>
    %77 = math.tanh %75 : vector<1x128xf32>
    %78 = arith.mulf %76, %77 : vector<1x128xf32>
    %cst_25 = arith.constant 0.000000e+00 : f32
    %79 = vector.broadcast %cst_25 : f32 to vector<1x128xf32>
    %80 = arith.maximumf %78, %79 : vector<1x128xf32>
    %81 = vector.extract_strided_slice %8 {offsets = [4, 0], sizes = [1, 128], strides = [1, 1]} : vector<8x128xf32> to vector<1x128xf32>
    %cst_26 = arith.constant dense<0.000000e+00> : vector<1x128xf32>
    %82 = tpu.matmul %78, %3, %cst_26 {dimension_numbers = #tpu.dot_dimension_numbers<[1], [0], [0], [1], [0, 0, 1, 1], [], []>} : vector<1x128xf32>, vector<128x128xf32>, vector<1x128xf32> -> vector<1x128xf32>
    %83 = arith.addf %81, %82 : vector<1x128xf32>
    %84 = arith.negf %83 : vector<1x128xf32>
    %85 = math.exp %84 : vector<1x128xf32>
    %cst_27 = arith.constant 1.000000e+00 : f32
    %86 = vector.broadcast %cst_27 : f32 to vector<1x128xf32>
    %87 = arith.addf %86, %85 : vector<1x128xf32>
    %88 = arith.divf %86, %87 : vector<1x128xf32>
    %89 = math.tanh %83 : vector<1x128xf32>
    %c96_i32_28 = arith.constant 96 : i32
    %90 = tpu.dynamic_rotate %88 by %c96_i32_28 dim 1 : vector<1x128xf32>, i32 -> vector<1x128xf32>
    %91 = arith.mulf %90, %75 : vector<1x128xf32>
    %c64_i32_29 = arith.constant 64 : i32
    %92 = tpu.dynamic_rotate %89 by %c64_i32_29 dim 1 : vector<1x128xf32>, i32 -> vector<1x128xf32>
    %93 = arith.mulf %88, %92 : vector<1x128xf32>
    %94 = arith.addf %91, %93 : vector<1x128xf32>
    %c32_i32_30 = arith.constant 32 : i32
    %95 = tpu.dynamic_rotate %88 by %c32_i32_30 dim 1 : vector<1x128xf32>, i32 -> vector<1x128xf32>
    %96 = math.tanh %94 : vector<1x128xf32>
    %97 = arith.mulf %95, %96 : vector<1x128xf32>
    %cst_31 = arith.constant 0.000000e+00 : f32
    %98 = vector.broadcast %cst_31 : f32 to vector<1x128xf32>
    %99 = arith.maximumf %97, %98 : vector<1x128xf32>
    %100 = vector.extract_strided_slice %8 {offsets = [5, 0], sizes = [1, 128], strides = [1, 1]} : vector<8x128xf32> to vector<1x128xf32>
    %cst_32 = arith.constant dense<0.000000e+00> : vector<1x128xf32>
    %101 = tpu.matmul %97, %3, %cst_32 {dimension_numbers = #tpu.dot_dimension_numbers<[1], [0], [0], [1], [0, 0, 1, 1], [], []>} : vector<1x128xf32>, vector<128x128xf32>, vector<1x128xf32> -> vector<1x128xf32>
    %102 = arith.addf %100, %101 : vector<1x128xf32>
    %103 = arith.negf %102 : vector<1x128xf32>
    %104 = math.exp %103 : vector<1x128xf32>
    %cst_33 = arith.constant 1.000000e+00 : f32
    %105 = vector.broadcast %cst_33 : f32 to vector<1x128xf32>
    %106 = arith.addf %105, %104 : vector<1x128xf32>
    %107 = arith.divf %105, %106 : vector<1x128xf32>
    %108 = math.tanh %102 : vector<1x128xf32>
    %c96_i32_34 = arith.constant 96 : i32
    %109 = tpu.dynamic_rotate %107 by %c96_i32_34 dim 1 : vector<1x128xf32>, i32 -> vector<1x128xf32>
    %110 = arith.mulf %109, %94 : vector<1x128xf32>
    %c64_i32_35 = arith.constant 64 : i32
    %111 = tpu.dynamic_rotate %108 by %c64_i32_35 dim 1 : vector<1x128xf32>, i32 -> vector<1x128xf32>
    %112 = arith.mulf %107, %111 : vector<1x128xf32>
    %113 = arith.addf %110, %112 : vector<1x128xf32>
    %c32_i32_36 = arith.constant 32 : i32
    %114 = tpu.dynamic_rotate %107 by %c32_i32_36 dim 1 : vector<1x128xf32>, i32 -> vector<1x128xf32>
    %115 = math.tanh %113 : vector<1x128xf32>
    %116 = arith.mulf %114, %115 : vector<1x128xf32>
    %cst_37 = arith.constant 0.000000e+00 : f32
    %117 = vector.broadcast %cst_37 : f32 to vector<1x128xf32>
    %118 = arith.maximumf %116, %117 : vector<1x128xf32>
    %119 = vector.extract_strided_slice %8 {offsets = [6, 0], sizes = [1, 128], strides = [1, 1]} : vector<8x128xf32> to vector<1x128xf32>
    %cst_38 = arith.constant dense<0.000000e+00> : vector<1x128xf32>
    %120 = tpu.matmul %116, %3, %cst_38 {dimension_numbers = #tpu.dot_dimension_numbers<[1], [0], [0], [1], [0, 0, 1, 1], [], []>} : vector<1x128xf32>, vector<128x128xf32>, vector<1x128xf32> -> vector<1x128xf32>
    %121 = arith.addf %119, %120 : vector<1x128xf32>
    %122 = arith.negf %121 : vector<1x128xf32>
    %123 = math.exp %122 : vector<1x128xf32>
    %cst_39 = arith.constant 1.000000e+00 : f32
    %124 = vector.broadcast %cst_39 : f32 to vector<1x128xf32>
    %125 = arith.addf %124, %123 : vector<1x128xf32>
    %126 = arith.divf %124, %125 : vector<1x128xf32>
    %127 = math.tanh %121 : vector<1x128xf32>
    %c96_i32_40 = arith.constant 96 : i32
    %128 = tpu.dynamic_rotate %126 by %c96_i32_40 dim 1 : vector<1x128xf32>, i32 -> vector<1x128xf32>
    %129 = arith.mulf %128, %113 : vector<1x128xf32>
    %c64_i32_41 = arith.constant 64 : i32
    %130 = tpu.dynamic_rotate %127 by %c64_i32_41 dim 1 : vector<1x128xf32>, i32 -> vector<1x128xf32>
    %131 = arith.mulf %126, %130 : vector<1x128xf32>
    %132 = arith.addf %129, %131 : vector<1x128xf32>
    %c32_i32_42 = arith.constant 32 : i32
    %133 = tpu.dynamic_rotate %126 by %c32_i32_42 dim 1 : vector<1x128xf32>, i32 -> vector<1x128xf32>
    %134 = math.tanh %132 : vector<1x128xf32>
    %135 = arith.mulf %133, %134 : vector<1x128xf32>
    %cst_43 = arith.constant 0.000000e+00 : f32
    %136 = vector.broadcast %cst_43 : f32 to vector<1x128xf32>
    %137 = arith.maximumf %135, %136 : vector<1x128xf32>
    %138 = vector.extract_strided_slice %8 {offsets = [7, 0], sizes = [1, 128], strides = [1, 1]} : vector<8x128xf32> to vector<1x128xf32>
    %cst_44 = arith.constant dense<0.000000e+00> : vector<1x128xf32>
    %139 = tpu.matmul %135, %3, %cst_44 {dimension_numbers = #tpu.dot_dimension_numbers<[1], [0], [0], [1], [0, 0, 1, 1], [], []>} : vector<1x128xf32>, vector<128x128xf32>, vector<1x128xf32> -> vector<1x128xf32>
    %140 = arith.addf %138, %139 : vector<1x128xf32>
    %141 = arith.negf %140 : vector<1x128xf32>
    %142 = math.exp %141 : vector<1x128xf32>
    %cst_45 = arith.constant 1.000000e+00 : f32
    %143 = vector.broadcast %cst_45 : f32 to vector<1x128xf32>
    %144 = arith.addf %143, %142 : vector<1x128xf32>
    %145 = arith.divf %143, %144 : vector<1x128xf32>
    %146 = math.tanh %140 : vector<1x128xf32>
    %c96_i32_46 = arith.constant 96 : i32
    %147 = tpu.dynamic_rotate %145 by %c96_i32_46 dim 1 : vector<1x128xf32>, i32 -> vector<1x128xf32>
    %148 = arith.mulf %147, %132 : vector<1x128xf32>
    %c64_i32_47 = arith.constant 64 : i32
    %149 = tpu.dynamic_rotate %146 by %c64_i32_47 dim 1 : vector<1x128xf32>, i32 -> vector<1x128xf32>
    %150 = arith.mulf %145, %149 : vector<1x128xf32>
    %151 = arith.addf %148, %150 : vector<1x128xf32>
    %c32_i32_48 = arith.constant 32 : i32
    %152 = tpu.dynamic_rotate %145 by %c32_i32_48 dim 1 : vector<1x128xf32>, i32 -> vector<1x128xf32>
    %153 = math.tanh %151 : vector<1x128xf32>
    %154 = arith.mulf %152, %153 : vector<1x128xf32>
    %cst_49 = arith.constant 0.000000e+00 : f32
    %155 = vector.broadcast %cst_49 : f32 to vector<1x128xf32>
    %156 = arith.maximumf %154, %155 : vector<1x128xf32>
    %157 = tpu.concatenate %23, %42, %61, %80, %99, %118, %137, %156 in 0 : vector<1x128xf32>, vector<1x128xf32>, vector<1x128xf32>, vector<1x128xf32>, vector<1x128xf32>, vector<1x128xf32>, vector<1x128xf32>, vector<1x128xf32> -> vector<8x128xf32>
    %c1 = arith.constant 1 : index
    %c0_50 = arith.constant 0 : index
    %158 = vector.load %arg8[%c1, %c0_50] : memref<14x256xf32, #tpu.memory_space<vmem>>, vector<1x256xf32>
    %c0_51 = arith.constant 0 : index
    %c0_52 = arith.constant 0 : index
    %159 = vector.load %arg3[%c0_51, %c0_52] : memref<128x256xbf16, #tpu.memory_space<vmem>>, vector<128x256xbf16>
    %160 = arith.extf %159 : vector<128x256xbf16> to vector<128x256xf32>
    %cst_53 = arith.constant dense<0.000000e+00> : vector<8x256xf32>
    %161 = tpu.matmul %157, %160, %cst_53 {dimension_numbers = #tpu.dot_dimension_numbers<[1], [0], [0], [1], [0, 0, 1, 1], [], []>} : vector<8x128xf32>, vector<128x256xf32>, vector<8x256xf32> -> vector<8x256xf32>
    %162 = vector.broadcast %158 : vector<1x256xf32> to vector<8x256xf32>
    %163 = arith.addf %161, %162 : vector<8x256xf32>
    %cst_54 = arith.constant 0.000000e+00 : f32
    %164 = vector.broadcast %cst_54 : f32 to vector<8x256xf32>
    %165 = arith.maximumf %163, %164 : vector<8x256xf32>
    %c2 = arith.constant 2 : index
    %c0_55 = arith.constant 0 : index
    %166 = vector.load %arg8[%c2, %c0_55] : memref<14x256xf32, #tpu.memory_space<vmem>>, vector<1x256xf32>
    %c3 = arith.constant 3 : index
    %c0_56 = arith.constant 0 : index
    %167 = vector.load %arg8[%c3, %c0_56] : memref<14x256xf32, #tpu.memory_space<vmem>>, vector<1x256xf32>
    %cst_57 = arith.constant dense<0.000000e+00> : vector<256xf32>
    %168 = vector.multi_reduction <add>, %165, %cst_57 [0] : vector<8x256xf32> to vector<256xf32>
    %169 = vector.shape_cast %168 : vector<256xf32> to vector<1x256xf32>
    %cst_58 = arith.constant 8.000000e+00 : f32
    %170 = vector.broadcast %cst_58 : f32 to vector<1x256xf32>
    %171 = arith.divf %169, %170 : vector<1x256xf32>
    %172 = arith.mulf %165, %165 : vector<8x256xf32>
    %cst_59 = arith.constant dense<0.000000e+00> : vector<256xf32>
    %173 = vector.multi_reduction <add>, %172, %cst_59 [0] : vector<8x256xf32> to vector<256xf32>
    %174 = vector.shape_cast %173 : vector<256xf32> to vector<1x256xf32>
    %cst_60 = arith.constant 8.000000e+00 : f32
    %175 = vector.broadcast %cst_60 : f32 to vector<1x256xf32>
    %176 = arith.divf %174, %175 : vector<1x256xf32>
    %177 = arith.mulf %171, %171 : vector<1x256xf32>
    %178 = arith.subf %176, %177 : vector<1x256xf32>
    %179 = vector.broadcast %171 : vector<1x256xf32> to vector<8x256xf32>
    %180 = arith.subf %165, %179 : vector<8x256xf32>
    %cst_61 = arith.constant 9.99999974E-6 : f32
    %181 = vector.broadcast %cst_61 : f32 to vector<1x256xf32>
    %182 = arith.addf %178, %181 : vector<1x256xf32>
    %183 = math.rsqrt %182 : vector<1x256xf32>
    %184 = vector.broadcast %183 : vector<1x256xf32> to vector<8x256xf32>
    %185 = arith.mulf %180, %184 : vector<8x256xf32>
    %186 = vector.broadcast %166 : vector<1x256xf32> to vector<8x256xf32>
    %187 = arith.mulf %185, %186 : vector<8x256xf32>
    %188 = vector.broadcast %167 : vector<1x256xf32> to vector<8x256xf32>
    %189 = arith.addf %187, %188 : vector<8x256xf32>
    %c4 = arith.constant 4 : index
    %c0_62 = arith.constant 0 : index
    %190 = vector.load %arg8[%c4, %c0_62] : memref<14x256xf32, #tpu.memory_space<vmem>>, vector<1x128xf32>
    %c0_63 = arith.constant 0 : index
    %c0_64 = arith.constant 0 : index
    %191 = vector.load %arg4[%c0_63, %c0_64] : memref<256x128xbf16, #tpu.memory_space<vmem>>, vector<256x128xbf16>
    %192 = arith.extf %191 : vector<256x128xbf16> to vector<256x128xf32>
    %cst_65 = arith.constant dense<0.000000e+00> : vector<8x128xf32>
    %193 = tpu.matmul %189, %192, %cst_65 {dimension_numbers = #tpu.dot_dimension_numbers<[1], [0], [0], [1], [0, 0, 1, 1], [], []>} : vector<8x256xf32>, vector<256x128xf32>, vector<8x128xf32> -> vector<8x128xf32>
    %194 = vector.broadcast %190 : vector<1x128xf32> to vector<8x128xf32>
    %195 = arith.addf %193, %194 : vector<8x128xf32>
    %cst_66 = arith.constant 0.000000e+00 : f32
    %196 = vector.broadcast %cst_66 : f32 to vector<8x128xf32>
    %197 = arith.maximumf %195, %196 : vector<8x128xf32>
    %c5 = arith.constant 5 : index
    %c0_67 = arith.constant 0 : index
    %198 = vector.load %arg8[%c5, %c0_67] : memref<14x256xf32, #tpu.memory_space<vmem>>, vector<1x128xf32>
    %c6 = arith.constant 6 : index
    %c0_68 = arith.constant 0 : index
    %199 = vector.load %arg8[%c6, %c0_68] : memref<14x256xf32, #tpu.memory_space<vmem>>, vector<1x128xf32>
    %cst_69 = arith.constant dense<0.000000e+00> : vector<128xf32>
    %200 = vector.multi_reduction <add>, %197, %cst_69 [0] : vector<8x128xf32> to vector<128xf32>
    %201 = vector.shape_cast %200 : vector<128xf32> to vector<1x128xf32>
    %cst_70 = arith.constant 8.000000e+00 : f32
    %202 = vector.broadcast %cst_70 : f32 to vector<1x128xf32>
    %203 = arith.divf %201, %202 : vector<1x128xf32>
    %204 = arith.mulf %197, %197 : vector<8x128xf32>
    %cst_71 = arith.constant dense<0.000000e+00> : vector<128xf32>
    %205 = vector.multi_reduction <add>, %204, %cst_71 [0] : vector<8x128xf32> to vector<128xf32>
    %206 = vector.shape_cast %205 : vector<128xf32> to vector<1x128xf32>
    %cst_72 = arith.constant 8.000000e+00 : f32
    %207 = vector.broadcast %cst_72 : f32 to vector<1x128xf32>
    %208 = arith.divf %206, %207 : vector<1x128xf32>
    %209 = arith.mulf %203, %203 : vector<1x128xf32>
    %210 = arith.subf %208, %209 : vector<1x128xf32>
    %211 = vector.broadcast %203 : vector<1x128xf32> to vector<8x128xf32>
    %212 = arith.subf %197, %211 : vector<8x128xf32>
    %cst_73 = arith.constant 9.99999974E-6 : f32
    %213 = vector.broadcast %cst_73 : f32 to vector<1x128xf32>
    %214 = arith.addf %210, %213 : vector<1x128xf32>
    %215 = math.rsqrt %214 : vector<1x128xf32>
    %216 = vector.broadcast %215 : vector<1x128xf32> to vector<8x128xf32>
    %217 = arith.mulf %212, %216 : vector<8x128xf32>
    %218 = vector.broadcast %198 : vector<1x128xf32> to vector<8x128xf32>
    %219 = arith.mulf %217, %218 : vector<8x128xf32>
    %220 = vector.broadcast %199 : vector<1x128xf32> to vector<8x128xf32>
    %221 = arith.addf %219, %220 : vector<8x128xf32>
    %c7 = arith.constant 7 : index
    %c0_74 = arith.constant 0 : index
    %222 = vector.load %arg8[%c7, %c0_74] : memref<14x256xf32, #tpu.memory_space<vmem>>, vector<1x128xf32>
    %c0_75 = arith.constant 0 : index
    %c0_76 = arith.constant 0 : index
    %223 = vector.load %arg5[%c0_75, %c0_76] : memref<128x128xbf16, #tpu.memory_space<vmem>>, vector<128x128xbf16>
    %224 = arith.extf %223 : vector<128x128xbf16> to vector<128x128xf32>
    %cst_77 = arith.constant dense<0.000000e+00> : vector<8x128xf32>
    %225 = tpu.matmul %221, %224, %cst_77 {dimension_numbers = #tpu.dot_dimension_numbers<[1], [0], [0], [1], [0, 0, 1, 1], [], []>} : vector<8x128xf32>, vector<128x128xf32>, vector<8x128xf32> -> vector<8x128xf32>
    %226 = vector.broadcast %222 : vector<1x128xf32> to vector<8x128xf32>
    %227 = arith.addf %225, %226 : vector<8x128xf32>
    %cst_78 = arith.constant 0.000000e+00 : f32
    %228 = vector.broadcast %cst_78 : f32 to vector<8x128xf32>
    %229 = arith.maximumf %227, %228 : vector<8x128xf32>
    %c8 = arith.constant 8 : index
    %c0_79 = arith.constant 0 : index
    %230 = vector.load %arg8[%c8, %c0_79] : memref<14x256xf32, #tpu.memory_space<vmem>>, vector<1x128xf32>
    %c9 = arith.constant 9 : index
    %c0_80 = arith.constant 0 : index
    %231 = vector.load %arg8[%c9, %c0_80] : memref<14x256xf32, #tpu.memory_space<vmem>>, vector<1x128xf32>
    %cst_81 = arith.constant dense<0.000000e+00> : vector<128xf32>
    %232 = vector.multi_reduction <add>, %229, %cst_81 [0] : vector<8x128xf32> to vector<128xf32>
    %233 = vector.shape_cast %232 : vector<128xf32> to vector<1x128xf32>
    %cst_82 = arith.constant 8.000000e+00 : f32
    %234 = vector.broadcast %cst_82 : f32 to vector<1x128xf32>
    %235 = arith.divf %233, %234 : vector<1x128xf32>
    %236 = arith.mulf %229, %229 : vector<8x128xf32>
    %cst_83 = arith.constant dense<0.000000e+00> : vector<128xf32>
    %237 = vector.multi_reduction <add>, %236, %cst_83 [0] : vector<8x128xf32> to vector<128xf32>
    %238 = vector.shape_cast %237 : vector<128xf32> to vector<1x128xf32>
    %cst_84 = arith.constant 8.000000e+00 : f32
    %239 = vector.broadcast %cst_84 : f32 to vector<1x128xf32>
    %240 = arith.divf %238, %239 : vector<1x128xf32>
    %241 = arith.mulf %235, %235 : vector<1x128xf32>
    %242 = arith.subf %240, %241 : vector<1x128xf32>
    %243 = vector.broadcast %235 : vector<1x128xf32> to vector<8x128xf32>
    %244 = arith.subf %229, %243 : vector<8x128xf32>
    %cst_85 = arith.constant 9.99999974E-6 : f32
    %245 = vector.broadcast %cst_85 : f32 to vector<1x128xf32>
    %246 = arith.addf %242, %245 : vector<1x128xf32>
    %247 = math.rsqrt %246 : vector<1x128xf32>
    %248 = vector.broadcast %247 : vector<1x128xf32> to vector<8x128xf32>
    %249 = arith.mulf %244, %248 : vector<8x128xf32>
    %250 = vector.broadcast %230 : vector<1x128xf32> to vector<8x128xf32>
    %251 = arith.mulf %249, %250 : vector<8x128xf32>
    %252 = vector.broadcast %231 : vector<1x128xf32> to vector<8x128xf32>
    %253 = arith.addf %251, %252 : vector<8x128xf32>
    %c10 = arith.constant 10 : index
    %c0_86 = arith.constant 0 : index
    %254 = vector.load %arg8[%c10, %c0_86] : memref<14x256xf32, #tpu.memory_space<vmem>>, vector<1x128xf32>
    %c0_87 = arith.constant 0 : index
    %c0_88 = arith.constant 0 : index
    %255 = vector.load %arg6[%c0_87, %c0_88] : memref<128x128xbf16, #tpu.memory_space<vmem>>, vector<128x128xbf16>
    %256 = arith.extf %255 : vector<128x128xbf16> to vector<128x128xf32>
    %cst_89 = arith.constant dense<0.000000e+00> : vector<8x128xf32>
    %257 = tpu.matmul %253, %256, %cst_89 {dimension_numbers = #tpu.dot_dimension_numbers<[1], [0], [0], [1], [0, 0, 1, 1], [], []>} : vector<8x128xf32>, vector<128x128xf32>, vector<8x128xf32> -> vector<8x128xf32>
    %258 = vector.broadcast %254 : vector<1x128xf32> to vector<8x128xf32>
    %259 = arith.addf %257, %258 : vector<8x128xf32>
    %cst_90 = arith.constant 0.000000e+00 : f32
    %260 = vector.broadcast %cst_90 : f32 to vector<8x128xf32>
    %261 = arith.maximumf %259, %260 : vector<8x128xf32>
    %c11 = arith.constant 11 : index
    %c0_91 = arith.constant 0 : index
    %262 = vector.load %arg8[%c11, %c0_91] : memref<14x256xf32, #tpu.memory_space<vmem>>, vector<1x128xf32>
    %c12 = arith.constant 12 : index
    %c0_92 = arith.constant 0 : index
    %263 = vector.load %arg8[%c12, %c0_92] : memref<14x256xf32, #tpu.memory_space<vmem>>, vector<1x128xf32>
    %cst_93 = arith.constant dense<0.000000e+00> : vector<128xf32>
    %264 = vector.multi_reduction <add>, %261, %cst_93 [0] : vector<8x128xf32> to vector<128xf32>
    %265 = vector.shape_cast %264 : vector<128xf32> to vector<1x128xf32>
    %cst_94 = arith.constant 8.000000e+00 : f32
    %266 = vector.broadcast %cst_94 : f32 to vector<1x128xf32>
    %267 = arith.divf %265, %266 : vector<1x128xf32>
    %268 = arith.mulf %261, %261 : vector<8x128xf32>
    %cst_95 = arith.constant dense<0.000000e+00> : vector<128xf32>
    %269 = vector.multi_reduction <add>, %268, %cst_95 [0] : vector<8x128xf32> to vector<128xf32>
    %270 = vector.shape_cast %269 : vector<128xf32> to vector<1x128xf32>
    %cst_96 = arith.constant 8.000000e+00 : f32
    %271 = vector.broadcast %cst_96 : f32 to vector<1x128xf32>
    %272 = arith.divf %270, %271 : vector<1x128xf32>
    %273 = arith.mulf %267, %267 : vector<1x128xf32>
    %274 = arith.subf %272, %273 : vector<1x128xf32>
    %275 = vector.broadcast %267 : vector<1x128xf32> to vector<8x128xf32>
    %276 = arith.subf %261, %275 : vector<8x128xf32>
    %cst_97 = arith.constant 9.99999974E-6 : f32
    %277 = vector.broadcast %cst_97 : f32 to vector<1x128xf32>
    %278 = arith.addf %274, %277 : vector<1x128xf32>
    %279 = math.rsqrt %278 : vector<1x128xf32>
    %280 = vector.broadcast %279 : vector<1x128xf32> to vector<8x128xf32>
    %281 = arith.mulf %276, %280 : vector<8x128xf32>
    %282 = vector.broadcast %262 : vector<1x128xf32> to vector<8x128xf32>
    %283 = arith.mulf %281, %282 : vector<8x128xf32>
    %284 = vector.broadcast %263 : vector<1x128xf32> to vector<8x128xf32>
    %285 = arith.addf %283, %284 : vector<8x128xf32>
    %c13 = arith.constant 13 : index
    %c0_98 = arith.constant 0 : index
    %286 = vector.load %arg8[%c13, %c0_98] : memref<14x256xf32, #tpu.memory_space<vmem>>, vector<1x128xf32>
    %c0_99 = arith.constant 0 : index
    %c0_100 = arith.constant 0 : index
    %287 = vector.load %arg7[%c0_99, %c0_100] : memref<128x128xbf16, #tpu.memory_space<vmem>>, vector<128x128xbf16>
    %288 = arith.extf %287 : vector<128x128xbf16> to vector<128x128xf32>
    %cst_101 = arith.constant dense<0.000000e+00> : vector<8x128xf32>
    %289 = tpu.matmul %285, %288, %cst_101 {dimension_numbers = #tpu.dot_dimension_numbers<[1], [0], [0], [1], [0, 0, 1, 1], [], []>} : vector<8x128xf32>, vector<128x128xf32>, vector<8x128xf32> -> vector<8x128xf32>
    %290 = vector.broadcast %286 : vector<1x128xf32> to vector<8x128xf32>
    %291 = arith.addf %289, %290 : vector<8x128xf32>
    %c0_102 = arith.constant 0 : index
    %c0_103 = arith.constant 0 : index
    %292 = vector.load %arg9[%c0_102, %c0_103] : memref<8x128xf32, #tpu.memory_space<vmem>>, vector<8x128xf32>
    tpu.vector_store %arg9[%c0_102, %c0_103], %291 {strides = array<i32>} : memref<8x128xf32, #tpu.memory_space<vmem>>, vector<8x128xf32>,
    return
  }
}

</mosaic_0001>

<bundles_post_ra>
// kernel: fused_forward.1
= control target key start
LH: loop header
LB: loop body
LE: loop exit
PB: predicated region body
PF: predicated region fallthrough
CT: control target
= control target key end

     0   :  { %14 = vsyncpa [#allocation3], 0  ;;  %s3390_s0 = inlined_call_operand.hbm [shape: f32[8,8], index: 0, kind: input, shape index: {}]   ;;  %s3391_s1 = inlined_call_operand.hbm [shape: bf16[8,128], index: 1, kind: input, shape index: {}]   ;;  %s3392_s2 = inlined_call_operand.hbm [shape: bf16[128,128], index: 2, kind: input, shape index: {}]   ;;  %s3393_s3 = inlined_call_operand.hbm [shape: bf16[128,256], index: 3, kind: input, shape index: {}]   ;;  %s3394_s4 = inlined_call_operand.hbm [shape: bf16[256,128], index: 4, kind: input, shape index: {}]   ;;  %s3395_s5 = inlined_call_operand.hbm [shape: bf16[128,128], index: 5, kind: input, shape index: {}]   ;;  %s3396_s6 = inlined_call_operand.hbm [shape: bf16[128,128], index: 6, kind: input, shape index: {}]   ;;  %s3397_s7 = inlined_call_operand.hbm [shape: bf16[128,128], index: 7, kind: input, shape index: {}]   ;;  %s3398_s8 = inlined_call_operand.hbm [shape: f32[14,256], index: 8, kind: input, shape index: {}]   ;;  %s3399_s9 = inlined_call_operand.vmem [shape: f32[8,128], index: 9, kind: output, shape index: {}]  }
   0x1   :  { %15 = vsyncpa [#allocation5], 0 }
   0x2   :  { %16 = vsyncpa [#allocation8], 0 }
   0x3   :  { %17 = vsyncpa [#allocation11], 0 }
   0x4   :  { %18 = vsyncpa [#allocation14], 0  ;;  %s2873_s30 = smov [#allocation4]   ;;  %s2874_s11 = smov [#allocation7]  }
   0x5   :  { %s35_s10 = sshll.u32 %s2873_s30, 4  ;;  %s56_s12 = sshll.u32 %s2874_s11, 4  ;;  %s36_s10 = int_to_ptr.vmem [resolvable:$true] %s35_s10  ;;  %s57_s12 = int_to_ptr.vmem [resolvable:$true] %s56_s12 }
   0x6   :  { %s2691_s13 = scalar_lea.vmem %s36_s10, 64  ;;  %p2696_p1 = scmp.lt.s32.totalorder %s36_s10, %s36_s10 }
   0x7   :  { %p2692_p0 = scmp.ne.s32.totalorder %s36_s10, %s2691_s13  ;;  %p2697_p2 = scmp.lt.s32.totalorder %s2691_s13, %s2691_s13 }
   0x9   :  { %p2698_p3 = por %p2697_p2, %p2696_p1 }
   0xb   :  { %p2699_p4 = pnand %p2698_p3, %p2692_p0 }
   0xd   :  { %2702 = shalt.err (!%p2699_p4)
}
   0xe   :  { %38 = dma.hbm_to_vmem [thread:$0]  %s3391_s1, 64, %s36_s10, [#allocation5]  }
   0xf   :  { %s2711_s16 = scalar_lea.vmem %s57_s12, 2048  ;;  %p2716_p6 = scmp.lt.s32.totalorder %s57_s12, %s57_s12 }
  0x10   :  { %p2712_p5 = scmp.ne.s32.totalorder %s57_s12, %s2711_s16  ;;  %p2717_p7 = scmp.lt.s32.totalorder %s2711_s16, %s2711_s16 }
  0x12   :  { %p2718_p8 = por %p2717_p7, %p2716_p6 }
  0x14   :  { %p2719_p9 = pnand %p2718_p8, %p2712_p5 }
  0x16   :  { %2722 = shalt.err (!%p2719_p9)
}
  0x17   :  { %s2875_s17 = smov 128   ;;  %s2876_s18 = smov 8  }
  0x18   :  { %62 = dma.hbm_to_vmem [thread:$0]  %s3393_s3, 2048, %s57_s12, [#allocation8], %s2875_s17, %s2875_s17, %s2876_s18  }
  0x19   :  { %s2877_s21 = smov [#allocation10]   ;;  %s2878_s23 = smov [#allocation13]  }
  0x1a   :  { %s80_s22 = sshll.u32 %s2877_s21, 4  ;;  %s104_s24 = sshll.u32 %s2878_s23, 4  ;;  %s81_s22 = int_to_ptr.vmem [resolvable:$true] %s80_s22  ;;  %s105_s24 = int_to_ptr.vmem [resolvable:$true] %s104_s24 }
  0x1b   :  { %s2731_s1 = scalar_lea.vmem %s81_s22, 1024  ;;  %p2736_p11 = scmp.lt.s32.totalorder %s81_s22, %s81_s22 }
  0x1c   :  { %p2732_p10 = scmp.ne.s32.totalorder %s81_s22, %s2731_s1  ;;  %p2737_p12 = scmp.lt.s32.totalorder %s2731_s1, %s2731_s1 }
  0x1e   :  { %p2738_p13 = por %p2737_p12, %p2736_p11 }
  0x20   :  { %p2739_p0 = pnand %p2738_p13, %p2732_p10 }
  0x22   :  { %2742 = shalt.err (!%p2739_p0)
}
  0x23   :  { %s2879_s25 = smov 64   ;;  %s2880_s26 = smov 4  }
  0x24   :  { %86 = dma.hbm_to_vmem [thread:$0]  %s3395_s5, 1024, %s81_s22, [#allocation11], %s2879_s25, %s2879_s25, %s2880_s26  }
  0x25   :  { %s2751_s28 = scalar_lea.vmem %s105_s24, 1024  ;;  %p2756_p2 = scmp.lt.s32.totalorder %s105_s24, %s105_s24 }
  0x26   :  { %p2752_p1 = scmp.ne.s32.totalorder %s105_s24, %s2751_s28  ;;  %p2757_p3 = scmp.lt.s32.totalorder %s2751_s28, %s2751_s28 }
  0x28   :  { %p2758_p4 = por %p2757_p3, %p2756_p2 }
  0x2a   :  { %p2759_p5 = pnand %p2758_p4, %p2752_p1 }
  0x2c   :  { %2762 = shalt.err (!%p2759_p5)
}
  0x2d   :  { %110 = dma.hbm_to_vmem [thread:$0]  %s3397_s7, 1024, %s105_s24, [#allocation14], %s2879_s25, %s2879_s25, %s2880_s26  }
  0x2e   :  { %s2881_s10 = smov [#allocation2]   ;;  %s2882_s12 = smov [#allocation6]  }
  0x2f   :  { %s25_s11 = sshll.u32 %s2881_s10, 4  ;;  %s44_s13 = sshll.u32 %s2882_s12, 4  ;;  %s26_s11 = int_to_ptr.vmem [resolvable:$true] %s25_s11  ;;  %s45_s13 = int_to_ptr.vmem [resolvable:$true] %s44_s13 }
  0x30   :  { %s2771_s5 = scalar_lea.vmem %s26_s11, 128  ;;  %p2776_p7 = scmp.lt.s32.totalorder %s26_s11, %s26_s11 }
  0x31   :  { %p2772_p6 = scmp.ne.s32.totalorder %s26_s11, %s2771_s5  ;;  %p2777_p8 = scmp.lt.s32.totalorder %s2771_s5, %s2771_s5 }
  0x33   :  { %p2778_p9 = por %p2777_p8, %p2776_p7 }
  0x35   :  { %p2779_p10 = pnand %p2778_p9, %p2772_p6 }
  0x37   :  { %2782 = shalt.err (!%p2779_p10)
}
  0x38   :  { %28 = dma.hbm_to_vmem [thread:$0]  %s3390_s0, 128, %s26_s11, [#allocation3]  }
  0x39   :  { %s2791_s16 = scalar_lea.vmem %s45_s13, 1024  ;;  %p2796_p12 = scmp.lt.s32.totalorder %s45_s13, %s45_s13 }
  0x3a   :  { %p2792_p11 = scmp.ne.s32.totalorder %s45_s13, %s2791_s16  ;;  %p2797_p13 = scmp.lt.s32.totalorder %s2791_s16, %s2791_s16 }
  0x3c   :  { %p2798_p0 = por %p2797_p13, %p2796_p12 }
  0x3e   :  { %p2799_p1 = pnand %p2798_p0, %p2792_p11 }
  0x40   :  { %2802 = shalt.err (!%p2799_p1)
}
  0x41   :  { %50 = dma.hbm_to_vmem [thread:$0]  %s3392_s2, 1024, %s45_s13, [#allocation5], %s2879_s25, %s2879_s25, %s2880_s26  }
  0x42   :  { %s2883_s18 = smov [#allocation9]   ;;  %s2884_s20 = smov [#allocation12]  }
  0x43   :  { %s68_s19 = sshll.u32 %s2883_s18, 4  ;;  %s92_s21 = sshll.u32 %s2884_s20, 4  ;;  %s69_s19 = int_to_ptr.vmem [resolvable:$true] %s68_s19  ;;  %s93_s21 = int_to_ptr.vmem [resolvable:$true] %s92_s21 }
  0x44   :  { %s2811_s0 = scalar_lea.vmem %s69_s19, 2048  ;;  %p2816_p3 = scmp.lt.s32.totalorder %s69_s19, %s69_s19 }
  0x45   :  { %p2812_p2 = scmp.ne.s32.totalorder %s69_s19, %s2811_s0  ;;  %p2817_p4 = scmp.lt.s32.totalorder %s2811_s0, %s2811_s0 }
  0x47   :  { %p2818_p5 = por %p2817_p4, %p2816_p3 }
  0x49   :  { %p2819_p6 = pnand %p2818_p5, %p2812_p2 }
  0x4b   :  { %2822 = shalt.err (!%p2819_p6)
}
  0x4c   :  { %74 = dma.hbm_to_vmem [thread:$0]  %s3394_s4, 2048, %s69_s19, [#allocation8], %s2879_s25, %s2879_s25, %s2880_s26  }
  0x4d   :  { %s2831_s2 = scalar_lea.vmem %s93_s21, 1024  ;;  %p2836_p8 = scmp.lt.s32.totalorder %s93_s21, %s93_s21 }
  0x4e   :  { %p2832_p7 = scmp.ne.s32.totalorder %s93_s21, %s2831_s2  ;;  %p2837_p9 = scmp.lt.s32.totalorder %s2831_s2, %s2831_s2 }
  0x50   :  { %p2838_p10 = por %p2837_p9, %p2836_p8 }
  0x52   :  { %p2839_p11 = pnand %p2838_p10, %p2832_p7 }
  0x54   :  { %2842 = shalt.err (!%p2839_p11)
}
  0x55   :  { %98 = dma.hbm_to_vmem [thread:$0]  %s3396_s6, 1024, %s93_s21, [#allocation11], %s2879_s25, %s2879_s25, %s2880_s26  }
  0x56   :  { %s2885_s27 = smov [#allocation15]  }
  0x57   :  { %s116_s3 = sshll.u32 %s2885_s27, 4  ;;  %s117_s3 = int_to_ptr.vmem [resolvable:$true] %s116_s3 }
  0x58   :  { %s2851_s28 = scalar_lea.vmem %s117_s3, 512  ;;  %p2856_p13 = scmp.lt.s32.totalorder %s117_s3, %s117_s3 }
  0x59   :  { %p2852_p12 = scmp.ne.s32.totalorder %s117_s3, %s2851_s28  ;;  %p2857_p0 = scmp.lt.s32.totalorder %s2851_s28, %s2851_s28 }
  0x5b   :  { %p2858_p1 = por %p2857_p0, %p2856_p13 }
  0x5d   :  { %p2859_p2 = pnand %p2858_p1, %p2852_p12 }
  0x5f   :  { %2862 = shalt.err (!%p2859_p2)
}
  0x60   :  { %s2886_s4 = smov 256   ;;  %s2887_s29 = smov 16  }
  0x61   :  { %122 = dma.hbm_to_vmem [thread:$0]  %s3398_s8, 512, %s117_s3, [#allocation14], %s2886_s4, %s2886_s4, %s2887_s29  }
  0x62   :  { %2863 = dma.done.wait [#allocation3], 128  }
  0x63   :  { %2864 = vsyncadd [#allocation3], 4294967168 }
  0x64   :  { %2865 = dma.done.wait [#allocation5], 1088  }
  0x65   :  { %2866 = vsyncadd [#allocation5], 4294966208 }
  0x66   :  { %2867 = dma.done.wait [#allocation8], 4096  }
  0x67   :  { %2868 = vsyncadd [#allocation8], 4294963200 }
  0x68   :  { %2869 = dma.done.wait [#allocation11], 2048  }
  0x69   :  { %2870 = vsyncadd [#allocation11], 4294965248 }
  0x6a   :  { %2871 = dma.done.wait [#allocation14], 1536  }
  0x6b   :  { %2872 = vsyncadd [#allocation14], 4294965760  ;;  %v2888_v0 = vmov 0.0   ;;  %vm2889_vm0 = vmmov 0   ;;  %v150_v1 = vld [vmem:[#allocation4] sm:$0xf] }
  0x6c   :  { %2235 = vmatprep.subr.mxu0 %v2888_v0  ;;  %2237 = vmatprep.mubr.msk.f32.mxu0 %vm2889_vm0, %v2888_v0  ;;  %v151_v2 = vunpack.c.l.bf16 %v150_v1  ;;  %v184_v3 = vld [vmem:[#allocation2] sm:$0xff]  ;;  %vm186_vm1 = vcmask 64512   ;;  %v1989_v9 = vld [vmem:[#allocation6 + $0x28] sm:$0xff]   ;;  %v185_v13 = vld [vmem:[#allocation15] ss:$0 sm:$0xff]  ;;  %s2890_s6 = smov 32  }
  0x6d   :  { %2240 = vmatprep.subr.mxu1 %v2888_v0  ;;  %2272 = vmatprep.mubr.msk.f32.mxu1 %vm2889_vm0, %v2888_v0  ;;  %v1991_v4 = vld [vmem:[#allocation6 + $0x38] sm:$0xff]   ;;  %v1990_v5 = vld [vmem:[#allocation6 + $0x30] sm:$0xff]   ;;  %v3010_v11 = vunpack.c.h.bf16 %v1989_v9  ;;  %v3016_v12 = vunpack.c.l.bf16 %v1989_v9  ;;  %v1988_v17 = vld [vmem:[#allocation6 + $0x20] sm:$0xff]   ;;  %s2891_s8 = smov 96   ;;  %vm1031_vm2 = vcmask 1040384   ;;  %vm1033_vm3 = vcmask 1041408  }
  0x6e   :  { %2236 = vmatpush3.msra.mxu0 %v151_v2  ;;  %v2993_v6 = vunpack.c.h.bf16 %v1991_v4  ;;  %v2995_v7 = vunpack.c.l.bf16 %v1991_v4  ;;  %v2998_v8 = vunpack.c.h.bf16 %v1990_v5  ;;  %v3004_v10 = vunpack.c.l.bf16 %v1990_v5  ;;  %v1987_v21 = vld [vmem:[#allocation6 + $0x18] sm:$0xff]   ;;  %v1986_v22 = vld [vmem:[#allocation6 + $0x10] sm:$0xff]   ;;  %v1985_v26 = vld [vmem:[#allocation6 + $0x8] sm:$0xff]  }
  0x6f   :  { %2238 = vmatmul.mubr.msk.f32.vlgmr.msra.gmra.mxu0 %vm186_vm1, %v184_v3  ;;  %2275 = vmatprep.subr.mxu0 %v2888_v0  ;;  %v3033_v19 = vunpack.c.h.bf16 %v1988_v17  ;;  %v3036_v20 = vunpack.c.l.bf16 %v1988_v17  ;;  %v3042_v23 = vunpack.c.h.bf16 %v1987_v21  ;;  %v3044_v24 = vunpack.c.l.bf16 %v1987_v21  ;;  %v1794_v29 = vld [vmem:[#allocation6] sm:$0xff]  }
  0x70   :  { %2307 = vmatprep.mubr.msk.f32.mxu0 %vm2889_vm0, %v2888_v0  ;;  %2241 = vmatpush3.msra.mxu1 %v2993_v6  ;;  %v3050_v25 = vunpack.c.h.bf16 %v1986_v22  ;;  %v3056_v27 = vunpack.c.l.bf16 %v1986_v22  ;;  %v3062_v28 = vunpack.c.h.bf16 %v1985_v26  ;;  %v3068_v30 = vunpack.c.l.bf16 %v1985_v26 }
  0x71   :  { %2276 = vmatpush3.msra.mxu0 %v2993_v6  ;;  %2242 = vmatprep.subr.mxu1 %v2888_v0  ;;  %v3075_v32 = vunpack.c.h.bf16 %v1794_v29  ;;  %v3084_v35 = vunpack.c.l.bf16 %v1794_v29  ;;  %vm1035_vm4 = vcmask 1042432   ;;  %vm1037_vm5 = vcmask 1043456  }
  0x72   :  { %2277 = vmatprep.subr.mxu0 %v2888_v0  ;;  %2243 = vmatpush3.msra.mxu1 %v2995_v7  ;;  %vm1039_vm6 = vcmask 1044480   ;;  %vm1041_vm7 = vcmask 1045504   ;;  %vm1043_vm8 = vcmask 1046528  }
  0x73   :  { %2278 = vmatpush3.msra.mxu0 %v2995_v7  ;;  %2244 = vmatprep.subr.mxu1 %v2888_v0 }
  0x74   :  { %2279 = vmatprep.subr.mxu0 %v2888_v0  ;;  %2245 = vmatpush3.msra.mxu1 %v2998_v8 }
  0x75   :  { %2280 = vmatpush3.msra.mxu0 %v2998_v8  ;;  %2246 = vmatprep.subr.mxu1 %v2888_v0 }
  0x76   :  { %2281 = vmatprep.subr.mxu0 %v2888_v0  ;;  %2247 = vmatpush3.msra.mxu1 %v3004_v10 }
  0x77   :  { %2282 = vmatpush3.msra.mxu0 %v3004_v10  ;;  %2248 = vmatprep.subr.mxu1 %v2888_v0 }
  0x78   :  { %2283 = vmatprep.subr.mxu0 %v2888_v0  ;;  %2249 = vmatpush3.msra.mxu1 %v3010_v11 }
  0x79   :  { %2284 = vmatpush3.msra.mxu0 %v3010_v11  ;;  %2250 = vmatprep.subr.mxu1 %v2888_v0 }
  0x7a   :  { %2285 = vmatprep.subr.mxu0 %v2888_v0  ;;  %2251 = vmatpush3.msra.mxu1 %v3016_v12 }
  0x7b   :  { %2286 = vmatpush3.msra.mxu0 %v3016_v12  ;;  %2252 = vmatprep.subr.mxu1 %v2888_v0 }
  0x7c   :  { %2287 = vmatprep.subr.mxu0 %v2888_v0  ;;  %2253 = vmatpush3.msra.mxu1 %v3033_v19 }
  0x7d   :  { %2288 = vmatpush3.msra.mxu0 %v3033_v19  ;;  %2254 = vmatprep.subr.mxu1 %v2888_v0 }
  0x7e   :  { %2289 = vmatprep.subr.mxu0 %v2888_v0  ;;  %2255 = vmatpush3.msra.mxu1 %v3036_v20 }
  0x7f   :  { %2290 = vmatpush3.msra.mxu0 %v3036_v20  ;;  %2256 = vmatprep.subr.mxu1 %v2888_v0 }
  0x80   :  { %2291 = vmatprep.subr.mxu0 %v2888_v0  ;;  %2257 = vmatpush3.msra.mxu1 %v3042_v23 }
  0x81   :  { %2292 = vmatpush3.msra.mxu0 %v3042_v23  ;;  %2258 = vmatprep.subr.mxu1 %v2888_v0 }
  0x82   :  { %2293 = vmatprep.subr.mxu0 %v2888_v0  ;;  %2259 = vmatpush3.msra.mxu1 %v3044_v24 }
  0x83   :  { %2294 = vmatpush3.msra.mxu0 %v3044_v24  ;;  %2260 = vmatprep.subr.mxu1 %v2888_v0 }
  0x84   :  { %2295 = vmatprep.subr.mxu0 %v2888_v0  ;;  %2261 = vmatpush3.msra.mxu1 %v3050_v25 }
  0x85   :  { %2296 = vmatpush3.msra.mxu0 %v3050_v25  ;;  %2262 = vmatprep.subr.mxu1 %v2888_v0 }
  0x86   :  { %2297 = vmatprep.subr.mxu0 %v2888_v0  ;;  %2263 = vmatpush3.msra.mxu1 %v3056_v27 }
  0x87   :  { %2298 = vmatpush3.msra.mxu0 %v3056_v27  ;;  %2264 = vmatprep.subr.mxu1 %v2888_v0 }
  0x88   :  { %2299 = vmatprep.subr.mxu0 %v2888_v0  ;;  %2265 = vmatpush3.msra.mxu1 %v3062_v28 }
  0x89   :  { %2266 = vmatprep.subr.mxu1 %v2888_v0  ;;  %2300 = vmatpush3.msra.mxu0 %v3062_v28 }
  0x8a   :  { %2267 = vmatpush3.msra.mxu1 %v3068_v30  ;;  %2301 = vmatprep.subr.mxu0 %v2888_v0 }
  0x8b   :  { %2268 = vmatprep.subr.mxu1 %v2888_v0  ;;  %2302 = vmatpush3.msra.mxu0 %v3068_v30 }
  0x8c   :  { %2269 = vmatpush3.msra.mxu1 %v3075_v32  ;;  %2303 = vmatprep.subr.mxu0 %v2888_v0 }
  0x8d   :  { %2270 = vmatprep.subr.mxu1 %v2888_v0  ;;  %2304 = vmatpush3.msra.mxu0 %v3075_v32 }
  0x8e   :  { %2271 = vmatpush3.msra.mxu1 %v3084_v35  ;;  %2305 = vmatprep.subr.mxu0 %v2888_v0 }
  0x8f   :  { %2306 = vmatpush3.msra.mxu0 %v3084_v35  ;;  %2310 = vmatprep.subr.mxu1 %v2888_v0 }
  0x90   :  { %2345 = vmatprep.subr.mxu0 %v2888_v0 }
 0x12f   :  { %v256_v14 = vpop.f32.mrf.mxu0 }
 0x130   :  { %v3029_v15 = vadd.f32 %v256_v14, %v185_v13 }
 0x131   :  { %v2239_v16 = vpop.f32.mrf.mxu0 }
 0x132   :  { %2609 = vtanh.f32 %v3029_v15  ;;  %v1785_v18 = vmul.f32 -1.442695, %v3029_v15 }
 0x134   :  { %2611 = vpow2.f32 %v1785_v18 }
 0x13f   :  { %v2610_v31 = vpop.eup %2609 }
 0x140   :  { %267 = vrot.lane.b32.xlu0 %v2610_v31, %s2879_s25 }
 0x141   :  { %v2612_v33 = vpop.eup %2611 }
 0x142   :  { %v263_v34 = vadd.f32 1.0, %v2612_v33 }
 0x144   :  { %2613 = vrcp.f32 %v263_v34 }
 0x151   :  { %v2614_v36 = vpop.eup %2613 }
 0x152   :  { %270 = vrot.lane.b32.xlu0 %v2614_v36, %s2890_s6 }
 0x1b2   :  { %v268_v37 = vpop.permute.xlu0 %267 }
 0x1b3   :  { %v269_v38 = vmul.f32 %v2614_v36, %v268_v37 }
 0x1b5   :  { %2615 = vtanh.f32 %v269_v38 }
 0x1c2   :  { %v2616_v39 = vpop.eup %2615 }
 0x1c4   :  { %v271_v40 = vpop.permute.xlu0 %270 }
 0x1c5   :  { %v3095_v41 = vmul.f32 %v2616_v39, %v271_v40 }
 0x1c7   :  { %2273 = vmatmul.mubr.f32.vlgmr.msra.gmra.mxu1 %v3095_v41  ;;  %v274_v1 = vmax.f32 %v3095_v41, 0.0 }
 0x1c8   :  { %2311 = vmatpush3.msra.mxu1 %v2993_v6  ;;  %2342 = vmatprep.mubr.msk.f32.mxu1 %vm2889_vm0, %v2888_v0 }
 0x1c9   :  { %2312 = vmatprep.subr.mxu1 %v2888_v0 }
 0x1ca   :  { %2313 = vmatpush3.msra.mxu1 %v2995_v7 }
 0x1cb   :  { %2314 = vmatprep.subr.mxu1 %v2888_v0 }
 0x1cc   :  { %2315 = vmatpush3.msra.mxu1 %v2998_v8 }
 0x1cd   :  { %2316 = vmatprep.subr.mxu1 %v2888_v0 }
 0x1ce   :  { %2317 = vmatpush3.msra.mxu1 %v3004_v10 }
 0x1cf   :  { %2318 = vmatprep.subr.mxu1 %v2888_v0 }
 0x1d0   :  { %2319 = vmatpush3.msra.mxu1 %v3010_v11 }
 0x1d1   :  { %2320 = vmatprep.subr.mxu1 %v2888_v0 }
 0x1d2   :  { %2321 = vmatpush3.msra.mxu1 %v3016_v12 }
 0x1d3   :  { %2322 = vmatprep.subr.mxu1 %v2888_v0 }
 0x1d4   :  { %2323 = vmatpush3.msra.mxu1 %v3033_v19 }
 0x1d5   :  { %2324 = vmatprep.subr.mxu1 %v2888_v0 }
 0x1d6   :  { %2325 = vmatpush3.msra.mxu1 %v3036_v20 }
 0x1d7   :  { %2326 = vmatprep.subr.mxu1 %v2888_v0 }
 0x1d8   :  { %2327 = vmatpush3.msra.mxu1 %v3042_v23 }
 0x1d9   :  { %2328 = vmatprep.subr.mxu1 %v2888_v0 }
 0x1da   :  { %2329 = vmatpush3.msra.mxu1 %v3044_v24 }
 0x1db   :  { %2330 = vmatprep.subr.mxu1 %v2888_v0 }
 0x1dc   :  { %2331 = vmatpush3.msra.mxu1 %v3050_v25 }
 0x1dd   :  { %2332 = vmatprep.subr.mxu1 %v2888_v0 }
 0x1de   :  { %2333 = vmatpush3.msra.mxu1 %v3056_v27 }
 0x1df   :  { %2334 = vmatprep.subr.mxu1 %v2888_v0 }
 0x1e0   :  { %2335 = vmatpush3.msra.mxu1 %v3062_v28 }
 0x1e1   :  { %2336 = vmatprep.subr.mxu1 %v2888_v0 }
 0x1e2   :  { %2337 = vmatpush3.msra.mxu1 %v3068_v30 }
 0x1e3   :  { %2338 = vmatprep.subr.mxu1 %v2888_v0 }
 0x1e4   :  { %2339 = vmatpush3.msra.mxu1 %v3075_v32 }
 0x1e5   :  { %2340 = vmatprep.subr.mxu1 %v2888_v0 }
 0x1e6   :  { %2341 = vmatpush3.msra.mxu1 %v3084_v35 }
 0x1e7   :  { %2380 = vmatprep.subr.mxu1 %v2888_v0 }
 0x287   :  { %v341_v42 = vpop.f32.mrf.mxu1 }
 0x288   :  { %v346_v43 = vrot.slane %v341_v42, 7 }
 0x289   :  { %v2274_v44 = vpop.f32.mrf.mxu1 }
 0x28a   :  { %v348_v45 = vadd.f32 %v346_v43, %v3029_v15 }
 0x28c   :  { %v1786_v46 = vmul.f32 -1.442695, %v348_v45  ;;  %2617 = vtanh.f32 %v348_v45 }
 0x28e   :  { %2619 = vpow2.f32 %v1786_v46 }
 0x299   :  { %v2618_v47 = vpop.eup %2617 }
 0x29a   :  { %v363_v48 = vrot.slane %v2618_v47, 1 }
 0x29b   :  { %v2620_v49 = vpop.eup %2619 }
 0x29c   :  { %v352_v50 = vadd.f32 1.0, %v2620_v49  ;;  %365 = vrot.lane.b32.xlu1 %v363_v48, %s2879_s25 }
 0x29e   :  { %2621 = vrcp.f32 %v352_v50 }
 0x2ab   :  { %v2622_v51 = vpop.eup %2621 }
 0x2ac   :  { %v357_v52 = vrot.slane %v2622_v51, 1 }
 0x2ae   :  { %375 = vrot.lane.b32.xlu0 %v357_v52, %s2890_s6  ;;  %359 = vrot.lane.b32.xlu1 %v357_v52, %s2891_s8 }
 0x30e   :  { %v366_v53 = vpop.permute.xlu1 %365 }
 0x30f   :  { %v368_v54 = vrot.slane %v366_v53, 7 }
 0x311   :  { %v370_v55 = vmul.f32 %v2622_v51, %v368_v54 }
 0x313   :  { %v372_v57 = vrot.slane %v370_v55, 1 }
 0x320   :  { %v360_v56 = vpop.permute.xlu1 %359  ;;  %v376_v61 = vpop.permute.xlu0 %375 }
 0x321   :  { %v361_v58 = vmul.f32 %v360_v56, %v269_v38 }
 0x323   :  { %v3136_v59 = vadd.f32 %v372_v57, %v361_v58 }
 0x325   :  { %2623 = vtanh.f32 %v3136_v59 }
 0x332   :  { %v2624_v60 = vpop.eup %2623 }
 0x333   :  { %v378_v62 = vmul.f32 %v2624_v60, %v376_v61 }
 0x335   :  { %v379_v63 = vmax.f32 %v378_v62, 0.0  ;;  %2308 = vmatmul.mubr.f32.vlgmr.msra.gmra.mxu0 %v378_v62 }
 0x336   :  { %2346 = vmatpush3.msra.mxu0 %v2993_v6  ;;  %2377 = vmatprep.mubr.msk.f32.mxu0 %vm2889_vm0, %v2888_v0 }
 0x337   :  { %v1011_v2 = vrot.slane %v379_v63, 7  ;;  %2347 = vmatprep.subr.mxu0 %v2888_v0 }
 0x338   :  { %2348 = vmatpush3.msra.mxu0 %v2995_v7 }
 0x339   :  { %v3145_v3 = vsel %vm1031_vm2, %v274_v1, %v1011_v2  ;;  %2349 = vmatprep.subr.mxu0 %v2888_v0 }
 0x33a   :  { %2350 = vmatpush3.msra.mxu0 %v2998_v8 }
 0x33b   :  { %2351 = vmatprep.subr.mxu0 %v2888_v0 }
 0x33c   :  { %2352 = vmatpush3.msra.mxu0 %v3004_v10 }
 0x33d   :  { %2353 = vmatprep.subr.mxu0 %v2888_v0 }
 0x33e   :  { %2354 = vmatpush3.msra.mxu0 %v3010_v11 }
 0x33f   :  { %2355 = vmatprep.subr.mxu0 %v2888_v0 }
 0x340   :  { %2356 = vmatpush3.msra.mxu0 %v3016_v12 }
 0x341   :  { %2357 = vmatprep.subr.mxu0 %v2888_v0 }
 0x342   :  { %2358 = vmatpush3.msra.mxu0 %v3033_v19 }
 0x343   :  { %2359 = vmatprep.subr.mxu0 %v2888_v0 }
 0x344   :  { %2360 = vmatpush3.msra.mxu0 %v3036_v20 }
 0x345   :  { %2361 = vmatprep.subr.mxu0 %v2888_v0 }
 0x346   :  { %2362 = vmatpush3.msra.mxu0 %v3042_v23 }
 0x347   :  { %2363 = vmatprep.subr.mxu0 %v2888_v0 }
 0x348   :  { %2364 = vmatpush3.msra.mxu0 %v3044_v24 }
 0x349   :  { %2365 = vmatprep.subr.mxu0 %v2888_v0 }
 0x34a   :  { %2366 = vmatpush3.msra.mxu0 %v3050_v25 }
 0x34b   :  { %2367 = vmatprep.subr.mxu0 %v2888_v0 }
 0x34c   :  { %2368 = vmatpush3.msra.mxu0 %v3056_v27 }
 0x34d   :  { %2369 = vmatprep.subr.mxu0 %v2888_v0 }
 0x34e   :  { %2370 = vmatpush3.msra.mxu0 %v3062_v28 }
 0x34f   :  { %2371 = vmatprep.subr.mxu0 %v2888_v0 }
 0x350   :  { %2372 = vmatpush3.msra.mxu0 %v3068_v30 }
 0x351   :  { %2373 = vmatprep.subr.mxu0 %v2888_v0 }
 0x352   :  { %2374 = vmatpush3.msra.mxu0 %v3075_v32 }
 0x353   :  { %2375 = vmatprep.subr.mxu0 %v2888_v0 }
 0x354   :  { %2376 = vmatpush3.msra.mxu0 %v3084_v35 }
 0x355   :  { %2415 = vmatprep.subr.mxu0 %v2888_v0 }
 0x3f5   :  { %v446_v4 = vpop.f32.mrf.mxu0 }
 0x3f6   :  { %v451_v5 = vrot.slane %v446_v4, 6 }
 0x3f7   :  { %v2309_v9 = vpop.f32.mrf.mxu0 }
 0x3f8   :  { %v453_v13 = vadd.f32 %v451_v5, %v3029_v15 }
 0x3fa   :  { %v1787_v14 = vmul.f32 -1.442695, %v453_v13  ;;  %2625 = vtanh.f32 %v453_v13 }
 0x3fc   :  { %2627 = vpow2.f32 %v1787_v14 }
 0x407   :  { %v2626_v16 = vpop.eup %2625 }
 0x408   :  { %v468_v17 = vrot.slane %v2626_v16, 2 }
 0x409   :  { %v2628_v18 = vpop.eup %2627 }
 0x40a   :  { %v457_v21 = vadd.f32 1.0, %v2628_v18  ;;  %470 = vrot.lane.b32.xlu1 %v468_v17, %s2879_s25 }
 0x40c   :  { %2629 = vrcp.f32 %v457_v21 }
 0x419   :  { %v2630_v22 = vpop.eup %2629 }
 0x41a   :  { %v462_v26 = vrot.slane %v2630_v22, 2 }
 0x41c   :  { %480 = vrot.lane.b32.xlu1 %v462_v26, %s2890_s6  ;;  %464 = vrot.lane.b32.xlu0 %v462_v26, %s2891_s8 }
 0x47c   :  { %v471_v29 = vpop.permute.xlu1 %470 }
 0x47d   :  { %v473_v31 = vrot.slane %v471_v29, 6 }
 0x47f   :  { %v475_v33 = vmul.f32 %v2630_v22, %v473_v31 }
 0x481   :  { %v477_v36 = vrot.slane %v475_v33, 2 }
 0x48e   :  { %v465_v34 = vpop.permute.xlu0 %464  ;;  %v481_v40 = vpop.permute.xlu1 %480 }
 0x48f   :  { %v466_v37 = vmul.f32 %v465_v34, %v3136_v59 }
 0x491   :  { %v3181_v38 = vadd.f32 %v477_v36, %v466_v37 }
 0x493   :  { %2631 = vtanh.f32 %v3181_v38 }
 0x4a0   :  { %v2632_v39 = vpop.eup %2631 }
 0x4a1   :  { %v483_v41 = vmul.f32 %v2632_v39, %v481_v40 }
 0x4a3   :  { %v484_v42 = vmax.f32 %v483_v41, 0.0  ;;  %2343 = vmatmul.mubr.f32.vlgmr.msra.gmra.mxu1 %v483_v41 }
 0x4a4   :  { %2381 = vmatpush3.msra.mxu1 %v2993_v6  ;;  %2412 = vmatprep.mubr.msk.f32.mxu1 %vm2889_vm0, %v2888_v0 }
 0x4a5   :  { %v1014_v43 = vrot.slane %v484_v42, 6  ;;  %2382 = vmatprep.subr.mxu1 %v2888_v0 }
 0x4a6   :  { %2383 = vmatpush3.msra.mxu1 %v2995_v7 }
 0x4a7   :  { %v3190_v44 = vsel %vm1033_vm3, %v3145_v3, %v1014_v43  ;;  %2384 = vmatprep.subr.mxu1 %v2888_v0 }
 0x4a8   :  { %2385 = vmatpush3.msra.mxu1 %v2998_v8 }
 0x4a9   :  { %2386 = vmatprep.subr.mxu1 %v2888_v0 }
 0x4aa   :  { %2387 = vmatpush3.msra.mxu1 %v3004_v10 }
 0x4ab   :  { %2388 = vmatprep.subr.mxu1 %v2888_v0 }
 0x4ac   :  { %2389 = vmatpush3.msra.mxu1 %v3010_v11 }
 0x4ad   :  { %2390 = vmatprep.subr.mxu1 %v2888_v0 }
 0x4ae   :  { %2391 = vmatpush3.msra.mxu1 %v3016_v12 }
 0x4af   :  { %2392 = vmatprep.subr.mxu1 %v2888_v0 }
 0x4b0   :  { %2393 = vmatpush3.msra.mxu1 %v3033_v19 }
 0x4b1   :  { %2394 = vmatprep.subr.mxu1 %v2888_v0 }
 0x4b2   :  { %2395 = vmatpush3.msra.mxu1 %v3036_v20 }
 0x4b3   :  { %2396 = vmatprep.subr.mxu1 %v2888_v0 }
 0x4b4   :  { %2397 = vmatpush3.msra.mxu1 %v3042_v23 }
 0x4b5   :  { %2398 = vmatprep.subr.mxu1 %v2888_v0 }
 0x4b6   :  { %2399 = vmatpush3.msra.mxu1 %v3044_v24 }
 0x4b7   :  { %2400 = vmatprep.subr.mxu1 %v2888_v0 }
 0x4b8   :  { %2401 = vmatpush3.msra.mxu1 %v3050_v25 }
 0x4b9   :  { %2402 = vmatprep.subr.mxu1 %v2888_v0 }
 0x4ba   :  { %2403 = vmatpush3.msra.mxu1 %v3056_v27 }
 0x4bb   :  { %2404 = vmatprep.subr.mxu1 %v2888_v0 }
 0x4bc   :  { %2405 = vmatpush3.msra.mxu1 %v3062_v28 }
 0x4bd   :  { %2406 = vmatprep.subr.mxu1 %v2888_v0 }
 0x4be   :  { %2407 = vmatpush3.msra.mxu1 %v3068_v30 }
 0x4bf   :  { %2408 = vmatprep.subr.mxu1 %v2888_v0 }
 0x4c0   :  { %2409 = vmatpush3.msra.mxu1 %v3075_v32 }
 0x4c1   :  { %2410 = vmatprep.subr.mxu1 %v2888_v0 }
 0x4c2   :  { %2411 = vmatpush3.msra.mxu1 %v3084_v35 }
 0x4c3   :  { %2450 = vmatprep.subr.mxu1 %v2888_v0 }
 0x563   :  { %v551_v45 = vpop.f32.mrf.mxu1 }
 0x564   :  { %v556_v46 = vrot.slane %v551_v45, 5 }
 0x565   :  { %v2344_v47 = vpop.f32.mrf.mxu1 }
 0x566   :  { %v558_v48 = vadd.f32 %v556_v46, %v3029_v15 }
 0x568   :  { %v1788_v49 = vmul.f32 -1.442695, %v558_v48  ;;  %2633 = vtanh.f32 %v558_v48 }
 0x56a   :  { %2635 = vpow2.f32 %v1788_v49 }
 0x575   :  { %v2634_v50 = vpop.eup %2633 }
 0x576   :  { %v573_v51 = vrot.slane %v2634_v50, 3 }
 0x577   :  { %v2636_v52 = vpop.eup %2635 }
 0x578   :  { %v562_v53 = vadd.f32 1.0, %v2636_v52  ;;  %575 = vrot.lane.b32.xlu0 %v573_v51, %s2879_s25 }
 0x57a   :  { %2637 = vrcp.f32 %v562_v53 }
 0x587   :  { %v2638_v54 = vpop.eup %2637 }
 0x588   :  { %v567_v55 = vrot.slane %v2638_v54, 3 }
 0x58a   :  { %585 = vrot.lane.b32.xlu0 %v567_v55, %s2890_s6  ;;  %569 = vrot.lane.b32.xlu1 %v567_v55, %s2891_s8 }
 0x5ea   :  { %v576_v56 = vpop.permute.xlu0 %575 }
 0x5eb   :  { %v578_v57 = vrot.slane %v576_v56, 5 }
 0x5ed   :  { %v580_v58 = vmul.f32 %v2638_v54, %v578_v57 }
 0x5ef   :  { %v582_v60 = vrot.slane %v580_v58, 3 }
 0x5fc   :  { %v570_v59 = vpop.permute.xlu1 %569  ;;  %v586_v1 = vpop.permute.xlu0 %585 }
 0x5fd   :  { %v571_v61 = vmul.f32 %v570_v59, %v3181_v38 }
 0x5ff   :  { %v3226_v62 = vadd.f32 %v582_v60, %v571_v61 }
 0x601   :  { %2639 = vtanh.f32 %v3226_v62 }
 0x60e   :  { %v2640_v63 = vpop.eup %2639 }
 0x60f   :  { %v588_v2 = vmul.f32 %v2640_v63, %v586_v1 }
 0x611   :  { %v589_v3 = vmax.f32 %v588_v2, 0.0  ;;  %2378 = vmatmul.mubr.f32.vlgmr.msra.gmra.mxu0 %v588_v2 }
 0x612   :  { %2416 = vmatpush3.msra.mxu0 %v2993_v6  ;;  %2447 = vmatprep.mubr.msk.f32.mxu0 %vm2889_vm0, %v2888_v0 }
 0x613   :  { %v1017_v4 = vrot.slane %v589_v3, 5  ;;  %2417 = vmatprep.subr.mxu0 %v2888_v0 }
 0x614   :  { %2418 = vmatpush3.msra.mxu0 %v2995_v7 }
 0x615   :  { %2419 = vmatprep.subr.mxu0 %v2888_v0  ;;  %v3236_v5 = vsel %vm1035_vm4, %v3190_v44, %v1017_v4 }
 0x616   :  { %2420 = vmatpush3.msra.mxu0 %v2998_v8 }
 0x617   :  { %2421 = vmatprep.subr.mxu0 %v2888_v0 }
 0x618   :  { %2422 = vmatpush3.msra.mxu0 %v3004_v10 }
 0x619   :  { %2423 = vmatprep.subr.mxu0 %v2888_v0 }
 0x61a   :  { %2424 = vmatpush3.msra.mxu0 %v3010_v11 }
 0x61b   :  { %2425 = vmatprep.subr.mxu0 %v2888_v0 }
 0x61c   :  { %2426 = vmatpush3.msra.mxu0 %v3016_v12 }
 0x61d   :  { %2427 = vmatprep.subr.mxu0 %v2888_v0 }
 0x61e   :  { %2428 = vmatpush3.msra.mxu0 %v3033_v19 }
 0x61f   :  { %2429 = vmatprep.subr.mxu0 %v2888_v0 }
 0x620   :  { %2430 = vmatpush3.msra.mxu0 %v3036_v20 }
 0x621   :  { %2431 = vmatprep.subr.mxu0 %v2888_v0 }
 0x622   :  { %2432 = vmatpush3.msra.mxu0 %v3042_v23 }
 0x623   :  { %2433 = vmatprep.subr.mxu0 %v2888_v0 }
 0x624   :  { %2434 = vmatpush3.msra.mxu0 %v3044_v24 }
 0x625   :  { %2435 = vmatprep.subr.mxu0 %v2888_v0 }
 0x626   :  { %2436 = vmatpush3.msra.mxu0 %v3050_v25 }
 0x627   :  { %2437 = vmatprep.subr.mxu0 %v2888_v0 }
 0x628   :  { %2438 = vmatpush3.msra.mxu0 %v3056_v27 }
 0x629   :  { %2439 = vmatprep.subr.mxu0 %v2888_v0 }
 0x62a   :  { %2440 = vmatpush3.msra.mxu0 %v3062_v28 }
 0x62b   :  { %2441 = vmatprep.subr.mxu0 %v2888_v0 }
 0x62c   :  { %2442 = vmatpush3.msra.mxu0 %v3068_v30 }
 0x62d   :  { %2443 = vmatprep.subr.mxu0 %v2888_v0 }
 0x62e   :  { %2444 = vmatpush3.msra.mxu0 %v3075_v32 }
 0x62f   :  { %2445 = vmatprep.subr.mxu0 %v2888_v0 }
 0x630   :  { %2446 = vmatpush3.msra.mxu0 %v3084_v35 }
 0x6d1   :  { %v656_v9 = vpop.f32.mrf.mxu0 }
 0x6d2   :  { %v661_v13 = vrot.slane %v656_v9, 4 }
 0x6d3   :  { %v2379_v14 = vpop.f32.mrf.mxu0 }
 0x6d4   :  { %v663_v16 = vadd.f32 %v661_v13, %v3029_v15 }
 0x6d6   :  { %v1789_v17 = vmul.f32 -1.442695, %v663_v16  ;;  %2641 = vtanh.f32 %v663_v16 }
 0x6d8   :  { %2643 = vpow2.f32 %v1789_v17 }
 0x6e3   :  { %v2642_v18 = vpop.eup %2641 }
 0x6e4   :  { %v678_v21 = vrot.slane %v2642_v18, 4 }
 0x6e5   :  { %v2644_v22 = vpop.eup %2643 }
 0x6e6   :  { %v667_v26 = vadd.f32 1.0, %v2644_v22  ;;  %680 = vrot.lane.b32.xlu1 %v678_v21, %s2879_s25 }
 0x6e8   :  { %2645 = vrcp.f32 %v667_v26 }
 0x6f5   :  { %v2646_v29 = vpop.eup %2645 }
 0x6f6   :  { %v672_v31 = vrot.slane %v2646_v29, 4 }
 0x6f8   :  { %690 = vrot.lane.b32.xlu1 %v672_v31, %s2890_s6  ;;  %674 = vrot.lane.b32.xlu0 %v672_v31, %s2891_s8 }
 0x758   :  { %v681_v33 = vpop.permute.xlu1 %680 }
 0x759   :  { %v683_v34 = vrot.slane %v681_v33, 4 }
 0x75b   :  { %v685_v36 = vmul.f32 %v2646_v29, %v683_v34 }
 0x75d   :  { %v687_v38 = vrot.slane %v685_v36, 4 }
 0x76a   :  { %v675_v37 = vpop.permute.xlu0 %674  ;;  %v691_v42 = vpop.permute.xlu1 %690 }
 0x76b   :  { %v676_v39 = vmul.f32 %v675_v37, %v3226_v62 }
 0x76d   :  { %v3270_v40 = vadd.f32 %v687_v38, %v676_v39  ;;  %v1062_v38 = vld [vmem:[#allocation7 + $0x78] sm:$0xff]  ;;  %v1061_v39 = vld [vmem:[#allocation7 + $0x70] sm:$0xff] }
 0x76f   :  { %2647 = vtanh.f32 %v3270_v40 }
 0x77c   :  { %v2648_v41 = vpop.eup %2647 }
 0x77d   :  { %v693_v43 = vmul.f32 %v2648_v41, %v691_v42  ;;  %v1093_v41 = vunpack.c.l.bf16 %v1062_v38  ;;  %v1094_v42 = vunpack.c.h.bf16 %v1062_v38 }
 0x77f   :  { %v694_v44 = vmax.f32 %v693_v43, 0.0  ;;  %2413 = vmatmul.mubr.f32.vlgmr.msra.gmra.mxu1 %v693_v43  ;;  %v1092_v43 = vunpack.c.h.bf16 %v1061_v39  ;;  %1106 = vmatprep.subr.mxu0 %v1094_v42 }
 0x780   :  { %2451 = vmatpush3.msra.mxu1 %v2993_v6  ;;  %2482 = vmatprep.mubr.msk.f32.mxu1 %vm2889_vm0, %v2888_v0 }
 0x781   :  { %v1020_v45 = vrot.slane %v694_v44, 4  ;;  %2452 = vmatprep.subr.mxu1 %v2888_v0  ;;  %v1091_v44 = vunpack.c.l.bf16 %v1061_v39 }
 0x782   :  { %2453 = vmatpush3.msra.mxu1 %v2995_v7 }
 0x783   :  { %2454 = vmatprep.subr.mxu1 %v2888_v0  ;;  %v1038_v46 = vsel %vm1037_vm5, %v3236_v5, %v1020_v45  ;;  %v1059_v45 = vld [vmem:[#allocation7 + $0x60] sm:$0xff] }
 0x784   :  { %2455 = vmatpush3.msra.mxu1 %v2998_v8 }
 0x785   :  { %2456 = vmatprep.subr.mxu1 %v2888_v0 }
 0x786   :  { %2457 = vmatpush3.msra.mxu1 %v3004_v10 }
 0x787   :  { %2458 = vmatprep.subr.mxu1 %v2888_v0 }
 0x788   :  { %2459 = vmatpush3.msra.mxu1 %v3010_v11 }
 0x789   :  { %2460 = vmatprep.subr.mxu1 %v2888_v0 }
 0x78a   :  { %2461 = vmatpush3.msra.mxu1 %v3016_v12 }
 0x78b   :  { %2462 = vmatprep.subr.mxu1 %v2888_v0 }
 0x78c   :  { %2463 = vmatpush3.msra.mxu1 %v3033_v19 }
 0x78d   :  { %2464 = vmatprep.subr.mxu1 %v2888_v0 }
 0x78e   :  { %2465 = vmatpush3.msra.mxu1 %v3036_v20 }
 0x78f   :  { %2466 = vmatprep.subr.mxu1 %v2888_v0 }
 0x790   :  { %2467 = vmatpush3.msra.mxu1 %v3042_v23 }
 0x791   :  { %2468 = vmatprep.subr.mxu1 %v2888_v0 }
 0x792   :  { %2469 = vmatpush3.msra.mxu1 %v3044_v24 }
 0x793   :  { %2470 = vmatprep.subr.mxu1 %v2888_v0 }
 0x794   :  { %2471 = vmatpush3.msra.mxu1 %v3050_v25 }
 0x795   :  { %2472 = vmatprep.subr.mxu1 %v2888_v0 }
 0x796   :  { %2473 = vmatpush3.msra.mxu1 %v3056_v27 }
 0x797   :  { %2474 = vmatprep.subr.mxu1 %v2888_v0 }
 0x798   :  { %2475 = vmatpush3.msra.mxu1 %v3062_v28 }
 0x799   :  { %2476 = vmatprep.subr.mxu1 %v2888_v0 }
 0x79a   :  { %2477 = vmatpush3.msra.mxu1 %v3068_v30 }
 0x79b   :  { %2478 = vmatprep.subr.mxu1 %v2888_v0 }
 0x79c   :  { %2479 = vmatpush3.msra.mxu1 %v3075_v32 }
 0x79d   :  { %2480 = vmatprep.subr.mxu1 %v2888_v0 }
 0x79e   :  { %2481 = vmatpush3.msra.mxu1 %v3084_v35 }
 0x83f   :  { %v761_v6 = vpop.f32.mrf.mxu1 }
 0x840   :  { %v766_v7 = vrot.slane %v761_v6, 3 }
 0x841   :  { %v2414_v8 = vpop.f32.mrf.mxu1 }
 0x842   :  { %v768_v10 = vadd.f32 %v766_v7, %v3029_v15  ;;  %v1088_v7 = vunpack.c.h.bf16 %v1059_v45 }
 0x844   :  { %v1790_v11 = vmul.f32 -1.442695, %v768_v10  ;;  %2649 = vtanh.f32 %v768_v10 }
 0x846   :  { %2651 = vpow2.f32 %v1790_v11 }
 0x851   :  { %v2650_v12 = vpop.eup %2649 }
 0x852   :  { %v783_v19 = vrot.slane %v2650_v12, 5 }
 0x853   :  { %v2652_v20 = vpop.eup %2651 }
 0x854   :  { %v772_v23 = vadd.f32 1.0, %v2652_v20  ;;  %785 = vrot.lane.b32.xlu0 %v783_v19, %s2879_s25  ;;  %v1058_v19 = vld [vmem:[#allocation7 + $0x58] sm:$0xff] }
 0x855   :  { %v1086_v20 = vunpack.c.h.bf16 %v1058_v19 }
 0x856   :  { %2653 = vrcp.f32 %v772_v23  ;;  %v1085_v23 = vunpack.c.l.bf16 %v1058_v19  ;;  %v2004_v19 = vld [vmem:[#allocation9 + $0x68] sm:$0xff]  }
 0x863   :  { %v2654_v24 = vpop.eup %2653 }
 0x864   :  { %v777_v25 = vrot.slane %v2654_v24, 5 }
 0x866   :  { %795 = vrot.lane.b32.xlu0 %v777_v25, %s2890_s6  ;;  %779 = vrot.lane.b32.xlu1 %v777_v25, %s2891_s8 }
 0x8c6   :  { %v786_v27 = vpop.permute.xlu0 %785 }
 0x8c7   :  { %v788_v28 = vrot.slane %v786_v27, 3 }
 0x8c9   :  { %v790_v30 = vmul.f32 %v2654_v24, %v788_v28  ;;  %v1057_v24 = vld [vmem:[#allocation7 + $0x50] sm:$0xff]  ;;  %v1056_v28 = vld [vmem:[#allocation7 + $0x48] sm:$0xff] }
 0x8ca   :  { %v1084_v25 = vunpack.c.h.bf16 %v1057_v24  ;;  %v1083_v27 = vunpack.c.l.bf16 %v1057_v24 }
 0x8cb   :  { %v792_v35 = vrot.slane %v790_v30, 5  ;;  %v1082_v30 = vunpack.c.h.bf16 %v1056_v28 }
 0x8d8   :  { %v780_v32 = vpop.permute.xlu1 %779  ;;  %v796_v50 = vpop.permute.xlu0 %795 }
 0x8d9   :  { %v781_v47 = vmul.f32 %v780_v32, %v3270_v40  ;;  %v1060_v40 = vld [vmem:[#allocation7 + $0x68] sm:$0xff]  ;;  %v1081_v32 = vunpack.c.l.bf16 %v1056_v28  ;;  %v2003_v28 = vld [vmem:[#allocation9 + $0x60] sm:$0xff]  }
 0x8da   :  { %v1089_v6 = vunpack.c.l.bf16 %v1060_v40 }
 0x8db   :  { %v794_v48 = vadd.f32 %v792_v35, %v781_v47  ;;  %v1055_v35 = vld [vmem:[#allocation7 + $0x40] sm:$0xff]  ;;  %v1054_v47 = vld [vmem:[#allocation7 + $0x38] sm:$0xff] }
 0x8dd   :  { %2655 = vtanh.f32 %v794_v48 }
 0x8ea   :  { %v2656_v49 = vpop.eup %2655 }
 0x8eb   :  { %v798_v51 = vmul.f32 %v2656_v49, %v796_v50  ;;  %v1079_v49 = vunpack.c.l.bf16 %v1055_v35  ;;  %v1080_v50 = vunpack.c.h.bf16 %v1055_v35 }
 0x8ed   :  { %v799_v52 = vmax.f32 %v798_v51, 0.0  ;;  %2448 = vmatmul.mubr.f32.vlgmr.msra.gmra.mxu0 %v798_v51  ;;  %v1078_v51 = vunpack.c.h.bf16 %v1054_v47 }
 0x8ee   :  { %1170 = vmatprep.mubr.f32.mxu0 %v2888_v0  ;;  %1107 = vmatpush1.msra.mxu0 %v1093_v41 }
 0x8ef   :  { %v1023_v53 = vrot.slane %v799_v52, 3  ;;  %1108 = vmatprep.subr.mxu0 %v1092_v43  ;;  %v1077_v52 = vunpack.c.l.bf16 %v1054_v47  ;;  %v1875_v47 = vunpack.c.l.bf16 %v2003_v28 }
 0x8f0   :  { %1109 = vmatpush1.msra.mxu0 %v1091_v44  ;;  %v2006_v44 = vld [vmem:[#allocation9 + $0x78] sm:$0xff]  }
 0x8f1   :  { %v1040_v54 = vsel %vm1039_vm6, %v1038_v46, %v1023_v53  ;;  %v1090_v46 = vunpack.c.h.bf16 %v1060_v40 }
 0x8f3   :  { %1110 = vmatprep.subr.mxu0 %v1090_v46  ;;  %v1998_v46 = vld [vmem:[#allocation9 + $0x38] sm:$0xff]  }
 0x8f4   :  { %1111 = vmatpush1.msra.mxu0 %v1089_v6  ;;  %v1856_v6 = vunpack.c.h.bf16 %v1998_v46 }
 0x8f5   :  { %1112 = vmatprep.subr.mxu0 %v1088_v7  ;;  %v1855_v7 = vunpack.c.l.bf16 %v1998_v46 }
 0x9ad   :  { %v866_v55 = vpop.f32.mrf.mxu0 }
 0x9ae   :  { %v871_v56 = vrot.slane %v866_v55, 2 }
 0x9af   :  { %v2449_v57 = vpop.f32.mrf.mxu0 }
 0x9b0   :  { %v873_v58 = vadd.f32 %v871_v56, %v3029_v15  ;;  %v1051_v56 = vld [vmem:[#allocation7 + $0x20] sm:$0xff] }
 0x9b2   :  { %v1791_v59 = vmul.f32 -1.442695, %v873_v58  ;;  %2657 = vtanh.f32 %v873_v58 }
 0x9b4   :  { %2659 = vpow2.f32 %v1791_v59 }
 0x9bf   :  { %v2658_v60 = vpop.eup %2657 }
 0x9c0   :  { %v888_v61 = vrot.slane %v2658_v60, 6 }
 0x9c1   :  { %v2660_v62 = vpop.eup %2659 }
 0x9c2   :  { %v877_v63 = vadd.f32 1.0, %v2660_v62  ;;  %890 = vrot.lane.b32.xlu1 %v888_v61, %s2879_s25  ;;  %v1050_v61 = vld [vmem:[#allocation7 + $0x18] sm:$0xff]  ;;  %v1072_v62 = vunpack.c.h.bf16 %v1051_v56 }
 0x9c4   :  { %2661 = vrcp.f32 %v877_v63  ;;  %v1071_v63 = vunpack.c.l.bf16 %v1051_v56 }
 0x9d1   :  { %v2662_v1 = vpop.eup %2661 }
 0x9d2   :  { %v882_v2 = vrot.slane %v2662_v1, 6 }
 0x9d4   :  { %900 = vrot.lane.b32.xlu1 %v882_v2, %s2890_s6  ;;  %884 = vrot.lane.b32.xlu0 %v882_v2, %s2891_s8  ;;  %v1070_v2 = vunpack.c.h.bf16 %v1050_v61 }
 0xa34   :  { %v891_v3 = vpop.permute.xlu1 %890 }
 0xa35   :  { %v893_v4 = vrot.slane %v891_v3, 2  ;;  %v1069_v3 = vunpack.c.l.bf16 %v1050_v61  ;;  %v2000_v61 = vld [vmem:[#allocation9 + $0x48] sm:$0xff]  }
 0xa37   :  { %v895_v5 = vmul.f32 %v2662_v1, %v893_v4  ;;  %v1049_v1 = vld [vmem:[#allocation7 + $0x10] sm:$0xff]  ;;  %v1048_v4 = vld [vmem:[#allocation7 + $0x8] sm:$0xff] }
 0xa39   :  { %v897_v13 = vrot.slane %v895_v5, 6  ;;  %v1068_v5 = vunpack.c.h.bf16 %v1049_v1 }
 0xa46   :  { %v885_v9 = vpop.permute.xlu0 %884  ;;  %v901_v18 = vpop.permute.xlu1 %900 }
 0xa47   :  { %v886_v14 = vmul.f32 %v885_v9, %v794_v48  ;;  %v1053_v48 = vld [vmem:[#allocation7 + $0x30] sm:$0xff]  ;;  %v1067_v9 = vunpack.c.l.bf16 %v1049_v1  ;;  %v1863_v1 = vunpack.c.l.bf16 %v2000_v61 }
 0xa48   :  { %v1076_v53 = vunpack.c.h.bf16 %v1053_v48  ;;  %v1075_v55 = vunpack.c.l.bf16 %v1053_v48 }
 0xa49   :  { %v3317_v16 = vadd.f32 %v897_v13, %v886_v14  ;;  %v1047_v13 = vld [vmem:[#allocation7] sm:$0xff]  ;;  %v1066_v14 = vunpack.c.h.bf16 %v1048_v4 }
 0xa4b   :  { %2663 = vtanh.f32 %v3317_v16 }
 0xa58   :  { %v2664_v17 = vpop.eup %2663 }
 0xa59   :  { %v903_v21 = vmul.f32 %v2664_v17, %v901_v18  ;;  %v1065_v17 = vunpack.c.l.bf16 %v1048_v4  ;;  %v1064_v18 = vunpack.c.h.bf16 %v1047_v13 }
 0xa5b   :  { %v904_v22 = vmax.f32 %v903_v21, 0.0  ;;  %2483 = vmatmul.mubr.f32.vlgmr.msra.gmra.mxu1 %v903_v21  ;;  %v1063_v21 = vunpack.c.l.bf16 %v1047_v13 }
 0xa5d   :  { %v1026_v26 = vrot.slane %v904_v22, 2 }
 0xa5f   :  { %v3320_v29 = vsel %vm1041_vm7, %v1040_v54, %v1026_v26  ;;  %v1052_v54 = vld [vmem:[#allocation7 + $0x28] sm:$0xff] }
 0xa60   :  { %v1074_v58 = vunpack.c.h.bf16 %v1052_v54  ;;  %v1073_v60 = vunpack.c.l.bf16 %v1052_v54 }
 0xb1b   :  { %v971_v31 = vpop.f32.mrf.mxu1 }
 0xb1c   :  { %v976_v33 = vrot.slane %v971_v31, 1 }
 0xb1d   :  { %v2484_v34 = vpop.f32.mrf.mxu1 }
 0xb1e   :  { %v978_v36 = vadd.f32 %v976_v33, %v3029_v15  ;;  %v1087_v15 = vunpack.c.l.bf16 %v1059_v45  ;;  %v1888_v45 = vunpack.c.h.bf16 %v2006_v44 }
 0xb20   :  { %v1792_v37 = vmul.f32 -1.442695, %v978_v36  ;;  %2665 = vtanh.f32 %v978_v36  ;;  %1113 = vmatpush1.msra.mxu0 %v1087_v15  ;;  %2149 = vmatprep.subr.mxu1 %v1888_v45 }
 0xb21   :  { %1114 = vmatprep.subr.mxu0 %v1086_v20  ;;  %2150 = vmatpush3.msra.mxu1 %v1856_v6  ;;  %v1880_v20 = vunpack.c.h.bf16 %v2004_v19 }
 0xb22   :  { %2667 = vpow2.f32 %v1792_v37  ;;  %1115 = vmatpush1.msra.mxu0 %v1085_v23  ;;  %v1996_v23 = vld [vmem:[#allocation9 + $0x28] sm:$0xff]  }
 0xb23   :  { %1116 = vmatprep.subr.mxu0 %v1084_v25  ;;  %v1848_v24 = vunpack.c.h.bf16 %v1996_v23  ;;  %v1879_v25 = vunpack.c.l.bf16 %v2004_v19 }
 0xb24   :  { %1117 = vmatpush1.msra.mxu0 %v1083_v27  ;;  %v1847_v27 = vunpack.c.l.bf16 %v1996_v23 }
 0xb25   :  { %1118 = vmatprep.subr.mxu0 %v1082_v30  ;;  %v1876_v30 = vunpack.c.h.bf16 %v2003_v28 }
 0xb26   :  { %1119 = vmatpush1.msra.mxu0 %v1081_v32  ;;  %v1995_v32 = vld [vmem:[#allocation9 + $0x20] sm:$0xff]  }
 0xb27   :  { %1120 = vmatprep.subr.mxu0 %v1080_v50  ;;  %v1844_v35 = vunpack.c.h.bf16 %v1995_v32  ;;  %v1843_v48 = vunpack.c.l.bf16 %v1995_v32 }
 0xb28   :  { %1121 = vmatpush1.msra.mxu0 %v1079_v49  ;;  %v2002_v49 = vld [vmem:[#allocation9 + $0x58] sm:$0xff]  }
 0xb29   :  { %1122 = vmatprep.subr.mxu0 %v1078_v51  ;;  %v1872_v50 = vunpack.c.h.bf16 %v2002_v49  ;;  %v1994_v51 = vld [vmem:[#allocation9 + $0x18] sm:$0xff]  }
 0xb2a   :  { %1123 = vmatpush1.msra.mxu0 %v1077_v52  ;;  %v1840_v52 = vunpack.c.h.bf16 %v1994_v51  ;;  %v1839_v54 = vunpack.c.l.bf16 %v1994_v51 }
 0xb2b   :  { %1124 = vmatprep.subr.mxu0 %v1076_v53  ;;  %v1871_v53 = vunpack.c.l.bf16 %v2002_v49 }
 0xb2c   :  { %1125 = vmatpush1.msra.mxu0 %v1075_v55  ;;  %v2001_v55 = vld [vmem:[#allocation9 + $0x50] sm:$0xff]  }
 0xb2d   :  { %v2666_v8 = vpop.eup %2665  ;;  %1126 = vmatprep.subr.mxu0 %v1074_v58  ;;  %v1868_v56 = vunpack.c.h.bf16 %v2001_v55 }
 0xb2e   :  { %v993_v10 = vrot.slane %v2666_v8, 7  ;;  %1127 = vmatpush1.msra.mxu0 %v1073_v60  ;;  %v2005_v8 = vld [vmem:[#allocation9 + $0x70] sm:$0xff]  }
 0xb2f   :  { %v2668_v11 = vpop.eup %2667  ;;  %1128 = vmatprep.subr.mxu0 %v1072_v62  ;;  %v1884_v15 = vunpack.c.h.bf16 %v2005_v8  ;;  %v1864_v62 = vunpack.c.h.bf16 %v2000_v61 }
 0xb30   :  { %v982_v12 = vadd.f32 1.0, %v2668_v11  ;;  %995 = vrot.lane.b32.xlu0 %v993_v10, %s2879_s25  ;;  %1129 = vmatpush1.msra.mxu0 %v1071_v63  ;;  %v1997_v10 = vld [vmem:[#allocation9 + $0x30] sm:$0xff]   ;;  %v1992_v63 = vld [vmem:[#allocation9 + $0x8] sm:$0xff]  }
 0xb31   :  { %1130 = vmatprep.subr.mxu0 %v1070_v2  ;;  %v1852_v11 = vunpack.c.h.bf16 %v1997_v10  ;;  %v1999_v2 = vld [vmem:[#allocation9 + $0x40] sm:$0xff]   ;;  %v1832_v4 = vunpack.c.h.bf16 %v1992_v63 }
 0xb32   :  { %2669 = vrcp.f32 %v982_v12  ;;  %1131 = vmatpush1.msra.mxu0 %v1069_v3  ;;  %v1851_v12 = vunpack.c.l.bf16 %v1997_v10  ;;  %v1826_v3 = vld [vmem:[#allocation9] sm:$0xff]  }
 0xb33   :  { %1132 = vmatprep.subr.mxu0 %v1068_v5  ;;  %v1831_v5 = vunpack.c.l.bf16 %v1992_v63  ;;  %v1828_v13 = vunpack.c.h.bf16 %v1826_v3 }
 0xb34   :  { %1133 = vmatpush1.msra.mxu0 %v1067_v9  ;;  %v1860_v9 = vunpack.c.h.bf16 %v1999_v2 }
 0xb35   :  { %1134 = vmatprep.subr.mxu0 %v1066_v14  ;;  %v1859_v14 = vunpack.c.l.bf16 %v1999_v2  ;;  %v1182_v2 = vld [vmem:[#allocation15 + $0x3] ss:$8 sm:$0x3] }
 0xb36   :  { %1135 = vmatpush1.msra.mxu0 %v1065_v17  ;;  %v1827_v17 = vunpack.c.l.bf16 %v1826_v3 }
 0xb37   :  { %1136 = vmatprep.subr.mxu0 %v1064_v18  ;;  %v1096_v18 = vlaneseq }
 0xb38   :  { %1137 = vmatpush1.msra.mxu0 %v1063_v21 }
 0xb39   :  { %2485 = vmatprep.subr.mxu0 %v2888_v0  ;;  %v1097_v21 = vshrl.u32 %v1096_v18, 7 }
 0xb3f   :  { %v2670_v57 = vpop.eup %2669 }
 0xb40   :  { %v987_v59 = vrot.slane %v2670_v57, 7 }
 0xb42   :  { %1005 = vrot.lane.b32.xlu0 %v987_v59, %s2890_s6  ;;  %989 = vrot.lane.b32.xlu1 %v987_v59, %s2891_s8  ;;  %v1867_v59 = vunpack.c.l.bf16 %v2001_v55 }
 0xba2   :  { %v996_v22 = vpop.permute.xlu0 %995 }
 0xba3   :  { %v998_v26 = vrot.slane %v996_v22, 1  ;;  %v3332_v22 = vsub.s32 0, %v1097_v21 }
 0xba5   :  { %v1000_v31 = vmul.f32 %v2670_v57, %v998_v26  ;;  %v1993_v57 = vld [vmem:[#allocation9 + $0x10] sm:$0xff]   ;;  %v1046_v26 = vld [vmem:[#allocation15 + $0x1] ss:$8 sm:$0x3] }
 0xba6   :  { %v1836_v58 = vunpack.c.h.bf16 %v1993_v57  ;;  %v1835_v60 = vunpack.c.l.bf16 %v1993_v57 }
 0xba7   :  { %v1002_v34 = vrot.slane %v1000_v31, 7  ;;  %v1102_v31 = vsub.s32 1, %v1097_v21 }
 0xbb4   :  { %v990_v33 = vpop.permute.xlu1 %989  ;;  %v1006_v39 = vpop.permute.xlu0 %1005 }
 0xbb5   :  { %v991_v36 = vmul.f32 %v990_v33, %v3317_v16  ;;  %v1887_v16 = vunpack.c.l.bf16 %v2006_v44  ;;  %v1099_v33 = vrot.slane %v1046_v26, %v3332_v22 }
 0xbb7   :  { %v1004_v37 = vadd.f32 %v1002_v34, %v991_v36  ;;  %2151 = vmatprep.subr.mxu1 %v1887_v16  ;;  %v1103_v34 = vrot.slane %v1046_v26, %v1102_v31  ;;  %v2013_v26 = vld [vmem:[#allocation10 + $0x38] sm:$0xff]  }
 0xbb8   :  { %2152 = vmatpush3.msra.mxu1 %v1855_v7 }
 0xbb9   :  { %2671 = vtanh.f32 %v1004_v37  ;;  %2153 = vmatprep.subr.mxu1 %v1884_v15 }
 0xbba   :  { %2154 = vmatpush3.msra.mxu1 %v1852_v11 }
 0xbc6   :  { %v2672_v38 = vpop.eup %2671 }
 0xbc7   :  { %v1008_v40 = vmul.f32 %v2672_v38, %v1006_v39 }
 0xbc9   :  { %v1009_v41 = vmax.f32 %v1008_v40, 0.0 }
 0xbcb   :  { %v1029_v42 = vrot.slane %v1009_v41, 1 }
 0xbcd   :  { %v1044_v43 = vsel %vm1043_vm8, %v3320_v29, %v1029_v42  ;;  %v1883_v29 = vunpack.c.l.bf16 %v2005_v8 }
 0xbce   :  { %1171 = vmatmul.mubr.f32.vlgmr.msra.gmra.mxu0 %v1044_v43 }
 0xbcf   :  { %2517 = vmatprep.mubr.msk.f32.mxu0 %vm2889_vm0, %v2888_v0  ;;  %2155 = vmatprep.subr.mxu1 %v1883_v29 }
 0xbd0   :  { %2156 = vmatpush3.msra.mxu1 %v1851_v12 }
 0xbd1   :  { %2157 = vmatprep.subr.mxu1 %v1880_v20 }
 0xbd2   :  { %2158 = vmatpush3.msra.mxu1 %v1848_v24 }
 0xbd3   :  { %2159 = vmatprep.subr.mxu1 %v1879_v25 }
 0xbd4   :  { %2160 = vmatpush3.msra.mxu1 %v1847_v27 }
 0xbd5   :  { %2161 = vmatprep.subr.mxu1 %v1876_v30 }
 0xbd6   :  { %2162 = vmatpush3.msra.mxu1 %v1844_v35 }
 0xbd7   :  { %2163 = vmatprep.subr.mxu1 %v1875_v47 }
 0xbd8   :  { %2164 = vmatpush3.msra.mxu1 %v1843_v48 }
 0xbd9   :  { %2165 = vmatprep.subr.mxu1 %v1872_v50 }
 0xbda   :  { %2166 = vmatpush3.msra.mxu1 %v1840_v52 }
 0xbdb   :  { %2167 = vmatprep.subr.mxu1 %v1871_v53 }
 0xbdc   :  { %2168 = vmatpush3.msra.mxu1 %v1839_v54 }
 0xbdd   :  { %2169 = vmatprep.subr.mxu1 %v1868_v56 }
 0xbde   :  { %2170 = vmatpush3.msra.mxu1 %v1836_v58 }
 0xbdf   :  { %2171 = vmatprep.subr.mxu1 %v1867_v59  ;;  %v1180_v59 = vld [vmem:[#allocation15 + $0x2] ss:$8 sm:$0x3] }
 0xbe0   :  { %2172 = vmatpush3.msra.mxu1 %v1835_v60  ;;  %v1230_v63 = vrot.slane %v1180_v59, %v3332_v22  ;;  %v1234_v3 = vrot.slane %v1180_v59, %v1102_v31 }
 0xbe1   :  { %2173 = vmatprep.subr.mxu1 %v1864_v62 }
 0xbe2   :  { %2174 = vmatpush3.msra.mxu1 %v1832_v4 }
 0xbe3   :  { %2175 = vmatprep.subr.mxu1 %v1863_v1 }
 0xbe4   :  { %2176 = vmatpush3.msra.mxu1 %v1831_v5 }
 0xbe5   :  { %2177 = vmatprep.subr.mxu1 %v1860_v9  ;;  %v1247_v9 = vrot.slane %v1182_v2, %v1102_v31 }
 0xbe6   :  { %2178 = vmatpush3.msra.mxu1 %v1828_v13  ;;  %v1243_v13 = vrot.slane %v1182_v2, %v3332_v22 }
 0xbe7   :  { %2179 = vmatprep.subr.mxu1 %v1859_v14 }
 0xbe8   :  { %2180 = vmatpush3.msra.mxu1 %v1827_v17 }
 0xbe9   :  { %2520 = vmatprep.subr.mxu1 %v2888_v0 }
 0xc8e   :  { %v1172_v36 = vpop.f32.mrf.mxu0 }
 0xc8f   :  { %v1173_v37 = vadd.f32 %v1172_v36, %v1099_v33  ;;  %v1920_v33 = vunpack.c.h.bf16 %v2013_v26  ;;  %v2012_v36 = vld [vmem:[#allocation10 + $0x30] sm:$0xff]  }
 0xc90   :  { %v1174_v38 = vpop.f32.mrf.mxu0  ;;  %v1916_v31 = vunpack.c.h.bf16 %v2012_v36  ;;  %v1915_v22 = vunpack.c.l.bf16 %v2012_v36 }
 0xc91   :  { %v1177_v39 = vmax.f32 %v1173_v37, 0.0  ;;  %v1175_v40 = vadd.f32 %v1174_v38, %v1103_v34  ;;  %2486 = vmatpush3.msra.mxu0 %v1920_v33  ;;  %v1919_v34 = vunpack.c.l.bf16 %v2013_v26  ;;  %v2011_v37 = vld [vmem:[#allocation10 + $0x28] sm:$0xff]   ;;  %v2017_v33 = vld [vmem:[#allocation12 + $0x20] sm:$0xff]  }
 0xc92   :  { %2487 = vmatprep.subr.mxu0 %v2888_v0  ;;  %v1912_v38 = vunpack.c.h.bf16 %v2011_v37  ;;  %v1939_v36 = vunpack.c.l.bf16 %v2017_v33 }
 0xc93   :  { %v1183_v41 = vrot.slane %v1177_v39, 4  ;;  %v1198_v42 = vmul.f32 %v1177_v39, %v1177_v39  ;;  %v1178_v43 = vmax.f32 %v1175_v40, 0.0  ;;  %2488 = vmatpush3.msra.mxu0 %v1919_v34  ;;  %v2010_v40 = vld [vmem:[#allocation10 + $0x20] sm:$0xff]   ;;  %v1940_v34 = vunpack.c.h.bf16 %v2017_v33  ;;  %v2021_v33 = vld [vmem:[#allocation13 + $0x8] sm:$0xff]  }
 0xc94   :  { %2489 = vmatprep.subr.mxu0 %v2888_v0 }
 0xc95   :  { %v1184_v44 = vadd.f32 %v1183_v41, %v1177_v39  ;;  %v1200_v45 = vrot.slane %v1198_v42, 4  ;;  %v1189_v46 = vrot.slane %v1178_v43, 4  ;;  %v1199_v6 = vmul.f32 %v1178_v43, %v1178_v43  ;;  %2490 = vmatpush3.msra.mxu0 %v1916_v31  ;;  %v2016_v31 = vld [vmem:[#allocation12 + $0x18] sm:$0xff]  }
 0xc96   :  { %2491 = vmatprep.subr.mxu0 %v2888_v0  ;;  %v1908_v41 = vunpack.c.h.bf16 %v2010_v40 }
 0xc97   :  { %v1185_v16 = vrot.slane %v1184_v44, 2  ;;  %v1201_v7 = vadd.f32 %v1200_v45, %v1198_v42  ;;  %v1190_v8 = vadd.f32 %v1189_v46, %v1178_v43  ;;  %v1206_v15 = vrot.slane %v1199_v6, 4  ;;  %2492 = vmatpush3.msra.mxu0 %v1915_v22  ;;  %v2008_v45 = vld [vmem:[#allocation10 + $0x10] sm:$0xff]  }
 0xc98   :  { %2493 = vmatprep.subr.mxu0 %v2888_v0  ;;  %v1907_v42 = vunpack.c.l.bf16 %v2010_v40  ;;  %v1936_v22 = vunpack.c.h.bf16 %v2016_v31 }
 0xc99   :  { %v1186_v10 = vadd.f32 %v1185_v16, %v1184_v44  ;;  %v1202_v11 = vrot.slane %v1201_v7, 2  ;;  %v1191_v29 = vrot.slane %v1190_v8, 2  ;;  %v1207_v12 = vadd.f32 %v1206_v15, %v1199_v6  ;;  %2494 = vmatpush3.msra.mxu0 %v1912_v38  ;;  %v2007_v16 = vld [vmem:[#allocation10 + $0x8] sm:$0xff]   ;;  %v1890_v15 = vld [vmem:[#allocation10] sm:$0xff]   ;;  %v2015_v38 = vld [vmem:[#allocation12 + $0x10] sm:$0xff]  }
 0xc9a   :  { %2495 = vmatprep.subr.mxu0 %v2888_v0  ;;  %v1900_v6 = vunpack.c.h.bf16 %v2008_v45  ;;  %v1931_v40 = vunpack.c.l.bf16 %v2015_v38 }
 0xc9b   :  { %v1187_v19 = vrot.slane %v1186_v10, 1  ;;  %v1203_v20 = vadd.f32 %v1202_v11, %v1201_v7  ;;  %v1192_v23 = vadd.f32 %v1191_v29, %v1190_v8  ;;  %v1208_v24 = vrot.slane %v1207_v12, 2 }
 0xc9c   :  { %v1899_v7 = vunpack.c.l.bf16 %v2008_v45  ;;  %v1896_v8 = vunpack.c.h.bf16 %v2007_v16  ;;  %v1892_v11 = vunpack.c.h.bf16 %v1890_v15  ;;  %v1891_v29 = vunpack.c.l.bf16 %v1890_v15 }
 0xc9d   :  { %v1188_v25 = vadd.f32 %v1187_v19, %v1186_v10  ;;  %v1204_v27 = vrot.slane %v1203_v20, 1  ;;  %v1193_v28 = vrot.slane %v1192_v23, 1  ;;  %v1209_v30 = vadd.f32 %v1208_v24, %v1207_v12  ;;  %v1252_v19 = vld [vmem:[#allocation15 + $0x4] ss:$0 sm:$0xff] }
 0xc9e   :  { %v1895_v10 = vunpack.c.l.bf16 %v2007_v16 }
 0xc9f   :  { %v1196_v32 = vmul.f32 0.125, %v1188_v25  ;;  %v1205_v35 = vadd.f32 %v1204_v27, %v1203_v20  ;;  %v1194_v47 = vadd.f32 %v1193_v28, %v1192_v23  ;;  %v1210_v48 = vrot.slane %v1209_v30, 1 }
 0xca1   :  { %v1212_v49 = vmul.f32 0.125, %v1205_v35  ;;  %v1214_v50 = vmul.f32 %v1196_v32, %v1196_v32  ;;  %v1197_v51 = vmul.f32 0.125, %v1194_v47  ;;  %v1211_v52 = vadd.f32 %v1210_v48, %v1209_v30 }
 0xca2   :  { %v1218_v60 = vsub.f32 %v1177_v39, %v1196_v32  ;;  %v1911_v39 = vunpack.c.l.bf16 %v2011_v37  ;;  %v1935_v37 = vunpack.c.l.bf16 %v2016_v31  ;;  %v1954_v31 = vld [vmem:[#allocation13] sm:$0xff]  }
 0xca3   :  { %v1216_v53 = vsub.f32 %v1212_v49, %v1214_v50  ;;  %v1215_v54 = vmul.f32 %v1197_v51, %v1197_v51  ;;  %v1213_v55 = vmul.f32 0.125, %v1211_v52  ;;  %v1219_v1 = vsub.f32 %v1178_v43, %v1197_v51  ;;  %v2009_v43 = vld [vmem:[#allocation10 + $0x18] sm:$0xff]  }
 0xca4   :  { %2496 = vmatpush3.msra.mxu0 %v1911_v39  ;;  %v1904_v44 = vunpack.c.h.bf16 %v2009_v43  ;;  %v1903_v46 = vunpack.c.l.bf16 %v2009_v43  ;;  %v1932_v39 = vunpack.c.h.bf16 %v2015_v38  ;;  %v1542_v38 = vld [vmem:[#allocation15 + $0x12] ss:$0 sm:$0xff] }
 0xca5   :  { %v1220_v56 = vadd.f32 1e-05, %v1216_v53  ;;  %v1217_v57 = vsub.f32 %v1213_v55, %v1215_v54  ;;  %2497 = vmatprep.subr.mxu0 %v2888_v0 }
 0xca6   :  { %2498 = vmatpush3.msra.mxu0 %v1908_v41  ;;  %v2014_v41 = vld [vmem:[#allocation12 + $0x8] sm:$0xff]  }
 0xca7   :  { %2673 = vrsqrt.f32 %v1220_v56  ;;  %v1221_v58 = vadd.f32 1e-05, %v1217_v57  ;;  %2499 = vmatprep.subr.mxu0 %v2888_v0  ;;  %v1927_v43 = vunpack.c.l.bf16 %v2014_v41 }
 0xca8   :  { %2500 = vmatpush3.msra.mxu0 %v1907_v42  ;;  %v1928_v42 = vunpack.c.h.bf16 %v2014_v41 }
 0xca9   :  { %2675 = vrsqrt.f32 %v1221_v58  ;;  %2501 = vmatprep.subr.mxu0 %v2888_v0 }
 0xcaa   :  { %2502 = vmatpush3.msra.mxu0 %v1904_v44  ;;  %v1922_v44 = vld [vmem:[#allocation12] sm:$0xff]  }
 0xcab   :  { %2503 = vmatprep.subr.mxu0 %v2888_v0  ;;  %v1924_v45 = vunpack.c.h.bf16 %v1922_v44 }
 0xcac   :  { %2504 = vmatpush3.msra.mxu0 %v1903_v46  ;;  %v1923_v46 = vunpack.c.l.bf16 %v1922_v44 }
 0xcad   :  { %2505 = vmatprep.subr.mxu0 %v2888_v0 }
 0xcae   :  { %2506 = vmatpush3.msra.mxu0 %v1900_v6  ;;  %v1413_v6 = vld [vmem:[#allocation15 + $0x7] ss:$0 sm:$0xff] }
 0xcaf   :  { %2507 = vmatprep.subr.mxu0 %v2888_v0 }
 0xcb0   :  { %2508 = vmatpush3.msra.mxu0 %v1899_v7 }
 0xcb1   :  { %2509 = vmatprep.subr.mxu0 %v2888_v0 }
 0xcb2   :  { %2510 = vmatpush3.msra.mxu0 %v1896_v8 }
 0xcb3   :  { %2511 = vmatprep.subr.mxu0 %v2888_v0 }
 0xcb4   :  { %v2674_v61 = vpop.eup %2673  ;;  %2512 = vmatpush3.msra.mxu0 %v1895_v10 }
 0xcb5   :  { %v1224_v62 = vmul.f32 %v2674_v61, %v1218_v60  ;;  %2513 = vmatprep.subr.mxu0 %v2888_v0 }
 0xcb6   :  { %v2676_v4 = vpop.eup %2675  ;;  %2514 = vmatpush3.msra.mxu0 %v1892_v11 }
 0xcb7   :  { %v1225_v5 = vmul.f32 %v2676_v4, %v1219_v1  ;;  %v1237_v14 = vmul.f32 %v1230_v63, %v1224_v62  ;;  %2515 = vmatprep.subr.mxu0 %v2888_v0  ;;  %v1388_v62 = vld [vmem:[#allocation15 + $0x5] ss:$0 sm:$0xff]  ;;  %v1389_v1 = vld [vmem:[#allocation15 + $0x6] ss:$0 sm:$0xff]  ;;  %v2020_v4 = vld [vmem:[#allocation12 + $0x38] sm:$0xff]  }
 0xcb8   :  { %2516 = vmatpush3.msra.mxu0 %v1891_v29 }
 0xcb9   :  { %v1238_v17 = vmul.f32 %v1234_v3, %v1225_v5  ;;  %v1250_v21 = vadd.f32 %v1243_v13, %v1237_v14  ;;  %2555 = vmatprep.subr.mxu0 %v2888_v0  ;;  %v1952_v5 = vunpack.c.h.bf16 %v2020_v4  ;;  %v2019_v13 = vld [vmem:[#allocation12 + $0x30] sm:$0xff]  }
 0xcba   :  { %v1948_v14 = vunpack.c.h.bf16 %v2019_v13 }
 0xcbb   :  { %v1251_v18 = vadd.f32 %v1247_v9, %v1238_v17  ;;  %v1951_v9 = vunpack.c.l.bf16 %v2020_v4  ;;  %v1947_v17 = vunpack.c.l.bf16 %v2019_v13  ;;  %v2024_v4 = vld [vmem:[#allocation13 + $0x20] sm:$0xff]   ;;  %v2023_v13 = vld [vmem:[#allocation13 + $0x18] sm:$0xff]  }
 0xcbd   :  { %1381 = vmatprep.mubr.f32.mxu1 %v1251_v18  ;;  %v2018_v18 = vld [vmem:[#allocation12 + $0x28] sm:$0xff]  }
 0xcbe   :  { %1382 = vmatmul.mubr.f32.vlgmr.msra.gmra.mxu1 %v1250_v21  ;;  %v1944_v21 = vunpack.c.h.bf16 %v2018_v18  ;;  %v1943_v26 = vunpack.c.l.bf16 %v2018_v18  ;;  %v2022_v18 = vld [vmem:[#allocation13 + $0x10] sm:$0xff]  }
 0xcbf   :  { %2552 = vmatprep.mubr.msk.f32.mxu1 %vm2889_vm0, %v2888_v0  ;;  %2521 = vmatpush3.msra.mxu1 %v1952_v5  ;;  %v1972_v5 = vunpack.c.h.bf16 %v2024_v4 }
 0xcc0   :  { %2522 = vmatprep.subr.mxu1 %v2888_v0 }
 0xcc1   :  { %2523 = vmatpush3.msra.mxu1 %v1951_v9  ;;  %v1971_v9 = vunpack.c.l.bf16 %v2024_v4 }
 0xcc2   :  { %2524 = vmatprep.subr.mxu1 %v2888_v0 }
 0xcc3   :  { %2525 = vmatpush3.msra.mxu1 %v1948_v14  ;;  %v1968_v14 = vunpack.c.h.bf16 %v2023_v13 }
 0xcc4   :  { %2526 = vmatprep.subr.mxu1 %v2888_v0 }
 0xcc5   :  { %2527 = vmatpush3.msra.mxu1 %v1947_v17  ;;  %v1967_v17 = vunpack.c.l.bf16 %v2023_v13 }
 0xcc6   :  { %2528 = vmatprep.subr.mxu1 %v2888_v0 }
 0xcc7   :  { %2529 = vmatpush3.msra.mxu1 %v1944_v21  ;;  %v1964_v21 = vunpack.c.h.bf16 %v2022_v18 }
 0xcc8   :  { %2530 = vmatprep.subr.mxu1 %v2888_v0 }
 0xcc9   :  { %2531 = vmatpush3.msra.mxu1 %v1943_v26  ;;  %v1963_v26 = vunpack.c.l.bf16 %v2022_v18 }
 0xcca   :  { %2532 = vmatprep.subr.mxu1 %v2888_v0 }
 0xccb   :  { %2533 = vmatpush3.msra.mxu1 %v1940_v34  ;;  %v1960_v34 = vunpack.c.h.bf16 %v2021_v33 }
 0xccc   :  { %2534 = vmatprep.subr.mxu1 %v2888_v0 }
 0xccd   :  { %2535 = vmatpush3.msra.mxu1 %v1939_v36  ;;  %v1959_v36 = vunpack.c.l.bf16 %v2021_v33 }
 0xcce   :  { %2536 = vmatprep.subr.mxu1 %v2888_v0 }
 0xccf   :  { %2537 = vmatpush3.msra.mxu1 %v1936_v22  ;;  %v1956_v22 = vunpack.c.h.bf16 %v1954_v31 }
 0xcd0   :  { %2538 = vmatprep.subr.mxu1 %v2888_v0 }
 0xcd1   :  { %2539 = vmatpush3.msra.mxu1 %v1935_v37  ;;  %v1955_v37 = vunpack.c.l.bf16 %v1954_v31 }
 0xcd2   :  { %2540 = vmatprep.subr.mxu1 %v2888_v0 }
 0xcd3   :  { %2541 = vmatpush3.msra.mxu1 %v1932_v39 }
 0xcd4   :  { %2542 = vmatprep.subr.mxu1 %v2888_v0 }
 0xcd5   :  { %2543 = vmatpush3.msra.mxu1 %v1931_v40 }
 0xcd6   :  { %2544 = vmatprep.subr.mxu1 %v2888_v0 }
 0xcd7   :  { %2545 = vmatpush3.msra.mxu1 %v1928_v42 }
 0xcd8   :  { %2546 = vmatprep.subr.mxu1 %v2888_v0 }
 0xcd9   :  { %2547 = vmatpush3.msra.mxu1 %v1927_v43 }
 0xcda   :  { %2548 = vmatprep.subr.mxu1 %v2888_v0 }
 0xcdb   :  { %2549 = vmatpush3.msra.mxu1 %v1924_v45 }
 0xcdc   :  { %2550 = vmatprep.subr.mxu1 %v2888_v0 }
 0xcdd   :  { %2551 = vmatpush3.msra.mxu1 %v1923_v46 }
 0xd7e   :  { %v2181_v12 = vpop.f32.mrf.mxu1 }
 0xd80   :  { %v2182_v20 = vpop.f32.mrf.mxu1 }
 0xd81   :  { %v2183_v23 = vadd.f32 %v2182_v20, %v2181_v12 }
 0xd83   :  { %v1384_v24 = vadd.f32 %v2183_v23, %v1252_v19 }
 0xd85   :  { %v1387_v25 = vmax.f32 %v1384_v24, 0.0 }
 0xd87   :  { %v1390_v27 = vrot.slane %v1387_v25, 4  ;;  %v1397_v28 = vmul.f32 %v1387_v25, %v1387_v25 }
 0xd89   :  { %v1391_v30 = vadd.f32 %v1390_v27, %v1387_v25  ;;  %v1398_v32 = vrot.slane %v1397_v28, 4 }
 0xd8b   :  { %v1392_v35 = vrot.slane %v1391_v30, 2  ;;  %v1399_v47 = vadd.f32 %v1398_v32, %v1397_v28 }
 0xd8d   :  { %v1393_v48 = vadd.f32 %v1392_v35, %v1391_v30  ;;  %v1400_v49 = vrot.slane %v1399_v47, 2 }
 0xd8f   :  { %v1394_v50 = vrot.slane %v1393_v48, 1  ;;  %v1401_v51 = vadd.f32 %v1400_v49, %v1399_v47 }
 0xd91   :  { %v1395_v52 = vadd.f32 %v1394_v50, %v1393_v48  ;;  %v1402_v53 = vrot.slane %v1401_v51, 1 }
 0xd93   :  { %v1396_v54 = vmul.f32 0.125, %v1395_v52  ;;  %v1403_v55 = vadd.f32 %v1402_v53, %v1401_v51  ;;  %v1517_v53 = vld [vmem:[#allocation15 + $0x10] ss:$0 sm:$0xff] }
 0xd95   :  { %v1404_v56 = vmul.f32 0.125, %v1403_v55  ;;  %v1405_v57 = vmul.f32 %v1396_v54, %v1396_v54  ;;  %v1407_v60 = vsub.f32 %v1387_v25, %v1396_v54  ;;  %v1518_v55 = vld [vmem:[#allocation15 + $0x11] ss:$0 sm:$0xff] }
 0xd97   :  { %v1406_v58 = vsub.f32 %v1404_v56, %v1405_v57 }
 0xd99   :  { %v1408_v59 = vadd.f32 1e-05, %v1406_v58  ;;  %v2027_v58 = vld [vmem:[#allocation13 + $0x38] sm:$0xff]  }
 0xd9b   :  { %2677 = vrsqrt.f32 %v1408_v59  ;;  %v1984_v59 = vunpack.c.h.bf16 %v2027_v58 }
 0xda8   :  { %v2678_v61 = vpop.eup %2677 }
 0xda9   :  { %v1410_v63 = vmul.f32 %v2678_v61, %v1407_v60  ;;  %v1983_v60 = vunpack.c.l.bf16 %v2027_v58  ;;  %v2026_v61 = vld [vmem:[#allocation13 + $0x30] sm:$0xff]  }
 0xdab   :  { %v1411_v2 = vmul.f32 %v1410_v63, %v1388_v62  ;;  %v1980_v62 = vunpack.c.h.bf16 %v2026_v61  ;;  %v1979_v63 = vunpack.c.l.bf16 %v2026_v61 }
 0xdad   :  { %v1412_v3 = vadd.f32 %v1411_v2, %v1389_v1  ;;  %v2025_v1 = vld [vmem:[#allocation13 + $0x28] sm:$0xff]  }
 0xdae   :  { %v1976_v2 = vunpack.c.h.bf16 %v2025_v1 }
 0xdaf   :  { %2518 = vmatmul.mubr.f32.vlgmr.msra.gmra.mxu0 %v1412_v3  ;;  %v1975_v3 = vunpack.c.l.bf16 %v2025_v1 }
 0xdb0   :  { %2587 = vmatprep.mubr.msk.f32.mxu0 %vm2889_vm0, %v2888_v0  ;;  %2556 = vmatpush3.msra.mxu0 %v1984_v59 }
 0xdb1   :  { %2557 = vmatprep.subr.mxu0 %v2888_v0 }
 0xdb2   :  { %2558 = vmatpush3.msra.mxu0 %v1983_v60 }
 0xdb3   :  { %2559 = vmatprep.subr.mxu0 %v2888_v0 }
 0xdb4   :  { %2560 = vmatpush3.msra.mxu0 %v1980_v62 }
 0xdb5   :  { %2561 = vmatprep.subr.mxu0 %v2888_v0 }
 0xdb6   :  { %2562 = vmatpush3.msra.mxu0 %v1979_v63 }
 0xdb7   :  { %2563 = vmatprep.subr.mxu0 %v2888_v0 }
 0xdb8   :  { %2564 = vmatpush3.msra.mxu0 %v1976_v2 }
 0xdb9   :  { %2565 = vmatprep.subr.mxu0 %v2888_v0 }
 0xdba   :  { %2566 = vmatpush3.msra.mxu0 %v1975_v3 }
 0xdbb   :  { %2567 = vmatprep.subr.mxu0 %v2888_v0 }
 0xdbc   :  { %2568 = vmatpush3.msra.mxu0 %v1972_v5 }
 0xdbd   :  { %2569 = vmatprep.subr.mxu0 %v2888_v0 }
 0xdbe   :  { %2570 = vmatpush3.msra.mxu0 %v1971_v9 }
 0xdbf   :  { %2571 = vmatprep.subr.mxu0 %v2888_v0 }
 0xdc0   :  { %2572 = vmatpush3.msra.mxu0 %v1968_v14 }
 0xdc1   :  { %2573 = vmatprep.subr.mxu0 %v2888_v0 }
 0xdc2   :  { %2574 = vmatpush3.msra.mxu0 %v1967_v17 }
 0xdc3   :  { %2575 = vmatprep.subr.mxu0 %v2888_v0 }
 0xdc4   :  { %2576 = vmatpush3.msra.mxu0 %v1964_v21 }
 0xdc5   :  { %2577 = vmatprep.subr.mxu0 %v2888_v0 }
 0xdc6   :  { %2578 = vmatpush3.msra.mxu0 %v1963_v26 }
 0xdc7   :  { %2579 = vmatprep.subr.mxu0 %v2888_v0 }
 0xdc8   :  { %2580 = vmatpush3.msra.mxu0 %v1960_v34 }
 0xdc9   :  { %2581 = vmatprep.subr.mxu0 %v2888_v0 }
 0xdca   :  { %2582 = vmatpush3.msra.mxu0 %v1959_v36 }
 0xdcb   :  { %2583 = vmatprep.subr.mxu0 %v2888_v0 }
 0xdcc   :  { %2584 = vmatpush3.msra.mxu0 %v1956_v22 }
 0xdcd   :  { %2585 = vmatprep.subr.mxu0 %v2888_v0 }
 0xdce   :  { %2586 = vmatpush3.msra.mxu0 %v1955_v37 }
 0xe6f   :  { %v1512_v16 = vpop.f32.mrf.mxu0 }
 0xe70   :  { %v1513_v7 = vadd.f32 %v1512_v16, %v1413_v6 }
 0xe71   :  { %v2519_v8 = vpop.f32.mrf.mxu0 }
 0xe72   :  { %v1516_v15 = vmax.f32 %v1513_v7, 0.0 }
 0xe74   :  { %v1519_v10 = vrot.slane %v1516_v15, 4  ;;  %v1526_v11 = vmul.f32 %v1516_v15, %v1516_v15 }
 0xe76   :  { %v1520_v29 = vadd.f32 %v1519_v10, %v1516_v15  ;;  %v1527_v12 = vrot.slane %v1526_v11, 4 }
 0xe78   :  { %v1521_v19 = vrot.slane %v1520_v29, 2  ;;  %v1528_v20 = vadd.f32 %v1527_v12, %v1526_v11 }
 0xe7a   :  { %v1522_v23 = vadd.f32 %v1521_v19, %v1520_v29  ;;  %v1529_v24 = vrot.slane %v1528_v20, 2 }
 0xe7c   :  { %v1523_v25 = vrot.slane %v1522_v23, 1  ;;  %v1530_v27 = vadd.f32 %v1529_v24, %v1528_v20 }
 0xe7e   :  { %v1524_v28 = vadd.f32 %v1523_v25, %v1522_v23  ;;  %v1531_v30 = vrot.slane %v1530_v27, 1 }
 0xe80   :  { %v1525_v32 = vmul.f32 0.125, %v1524_v28  ;;  %v1532_v35 = vadd.f32 %v1531_v30, %v1530_v27  ;;  %v1646_v28 = vld [vmem:[#allocation15 + $0x13] ss:$0 sm:$0xff] }
 0xe82   :  { %v1533_v47 = vmul.f32 0.125, %v1532_v35  ;;  %v1534_v48 = vmul.f32 %v1525_v32, %v1525_v32  ;;  %v1536_v51 = vsub.f32 %v1516_v15, %v1525_v32  ;;  %v1647_v32 = vld [vmem:[#allocation15 + $0x14] ss:$0 sm:$0xff] }
 0xe84   :  { %v1535_v49 = vsub.f32 %v1533_v47, %v1534_v48  ;;  %v1671_v48 = vld [vmem:[#allocation15 + $0x15] ss:$0 sm:$0xff] }
 0xe86   :  { %v1537_v50 = vadd.f32 1e-05, %v1535_v49 }
 0xe88   :  { %2679 = vrsqrt.f32 %v1537_v50 }
 0xe95   :  { %v2680_v52 = vpop.eup %2679 }
 0xe96   :  { %v1539_v54 = vmul.f32 %v2680_v52, %v1536_v51 }
 0xe98   :  { %v1540_v56 = vmul.f32 %v1539_v54, %v1517_v53 }
 0xe9a   :  { %v1541_v57 = vadd.f32 %v1540_v56, %v1518_v55 }
 0xe9c   :  { %2553 = vmatmul.mubr.f32.vlgmr.msra.gmra.mxu1 %v1541_v57 }
 0xf5c   :  { %v1641_v39 = vpop.f32.mrf.mxu1 }
 0xf5d   :  { %v1642_v40 = vadd.f32 %v1641_v39, %v1542_v38 }
 0xf5e   :  { %v2554_v41 = vpop.f32.mrf.mxu1 }
 0xf5f   :  { %v1645_v42 = vmax.f32 %v1642_v40, 0.0 }
 0xf61   :  { %v1648_v43 = vrot.slane %v1645_v42, 4  ;;  %v1655_v44 = vmul.f32 %v1645_v42, %v1645_v42 }
 0xf63   :  { %v1649_v45 = vadd.f32 %v1648_v43, %v1645_v42  ;;  %v1656_v46 = vrot.slane %v1655_v44, 4 }
 0xf65   :  { %v1650_v6 = vrot.slane %v1649_v45, 2  ;;  %v1657_v16 = vadd.f32 %v1656_v46, %v1655_v44 }
 0xf67   :  { %v1651_v7 = vadd.f32 %v1650_v6, %v1649_v45  ;;  %v1658_v8 = vrot.slane %v1657_v16, 2 }
 0xf69   :  { %v1652_v15 = vrot.slane %v1651_v7, 1  ;;  %v1659_v10 = vadd.f32 %v1658_v8, %v1657_v16 }
 0xf6b   :  { %v1653_v11 = vadd.f32 %v1652_v15, %v1651_v7  ;;  %v1660_v29 = vrot.slane %v1659_v10, 1 }
 0xf6d   :  { %v1654_v12 = vmul.f32 0.125, %v1653_v11  ;;  %v1661_v0 = vadd.f32 %v1660_v29, %v1659_v10 }
 0xf6f   :  { %v1662_v19 = vmul.f32 0.125, %v1661_v0  ;;  %v1663_v20 = vmul.f32 %v1654_v12, %v1654_v12  ;;  %v1665_v25 = vsub.f32 %v1645_v42, %v1654_v12 }
 0xf71   :  { %v1664_v23 = vsub.f32 %v1662_v19, %v1663_v20 }
 0xf73   :  { %v1666_v24 = vadd.f32 1e-05, %v1664_v23 }
 0xf75   :  { %2681 = vrsqrt.f32 %v1666_v24 }
 0xf82   :  { %v2682_v27 = vpop.eup %2681 }
 0xf83   :  { %v1668_v30 = vmul.f32 %v2682_v27, %v1665_v25 }
 0xf85   :  { %v1669_v35 = vmul.f32 %v1668_v30, %v1646_v28 }
 0xf87   :  { %v1670_v47 = vadd.f32 %v1669_v35, %v1647_v32 }
 0xf89   :  { %2588 = vmatmul.mubr.f32.vlgmr.msra.gmra.mxu0 %v1670_v47 }
0x1049   :  { %v1770_v49 = vpop.f32.mrf.mxu0 }
0x104a   :  { %v1771_v50 = vadd.f32 %v1770_v49, %v1671_v48 }
0x104b   :  { %v2589_v51 = vpop.f32.mrf.mxu0 }
0x104c   :  { %1774 = vst [vmem:[%s3399_s9] sm:$0xff] %v1771_v50 }
0x104d   :  { %1779 = vsyncpa [#allocation3], 1 }
0x104e   :  { %1780 = vsyncpa [#allocation5], 1 }
0x104f   :  { %1781 = vsyncpa [#allocation8], 1 }
0x1050   :  { %1782 = vsyncpa [#allocation11], 1 }
0x1051   :  { %1783 = vsyncpa [#allocation14], 1 }

</bundles_post_ra>
